<compile_context>
chip_gen: v5e
topology: v5e:2x2
jax: 0.10.0
libtpu: 0.0.40
codegen_flags: <defaults>
</compile_context>

<pallas_src>
import numpy as np
import jax
import jax.numpy as jnp
from jax import lax
from jax.experimental import pallas as pl
from jax.experimental.pallas import tpu as pltpu


# ---------------------------------------------------------------------------
# VMEM budget helpers
# ---------------------------------------------------------------------------
def _vmem_budget_bytes():
    """Per-core VMEM cap with headroom (stays well below v7x's 64 MiB physical)."""
    try:
        cap = int(pltpu.get_tpu_info().vmem_capacity_bytes)
    except Exception:
        cap = 64 * 1024 * 1024
    return cap * 3 // 4


def _vmem_limit(est_bytes):
    return int(min(_vmem_budget_bytes(), max(32 * 1024 * 1024, 3 * int(est_bytes))))


# ---------------------------------------------------------------------------
# Bilinear x2 upsample (align_corners=True) as matmuls with precomputed
# interpolation matrices A (Ho x Hi) and B (Wo x Wi).  Channel-tiled.
# ---------------------------------------------------------------------------
def _interp_matrix(out_size, in_size):
    """Row-stochastic matrix replicating torch Upsample(bilinear, align_corners=True)."""
    m = np.zeros((out_size, in_size), dtype=np.float32)
    if out_size == 1:
        m[0, 0] = 1.0
        return m
    for i in range(out_size):
        src = i * (in_size - 1) / (out_size - 1)
        p0 = int(np.floor(src))
        p1 = min(p0 + 1, in_size - 1)
        w1 = src - p0
        m[i, p0] += 1.0 - w1
        m[i, p1] += w1
    return m


def _upsample_kernel(x_ref, a_ref, b_ref, o_ref):
    x = x_ref[0].astype(jnp.float32)                       # (Hi, Wi, tc)
    # H pass: contraction over x's leading axis -> one MXU matmul.
    t = jnp.einsum("ip,pqc->iqc", a_ref[...], x, preferred_element_type=jnp.float32)
    # TODO(synk): the W pass below implies an XLU relayout; per-tile fusion into the
    #             conv kernel (or a shift/FMA formulation) would avoid it (perf only).
    o = jnp.einsum("jq,iqc->ijc", b_ref[...], t, preferred_element_type=jnp.float32)
    o_ref[0] = o.astype(o_ref.dtype)


def bilinear_upsample_x2(x_nhwc, out_dtype=None):
    n, hi, wi, c = x_nhwc.shape
    ho, wo = 2 * hi, 2 * wi
    out_dtype = x_nhwc.dtype if out_dtype is None else out_dtype
    a = jnp.asarray(_interp_matrix(ho, hi))
    b = jnp.asarray(_interp_matrix(wo, wi))
    # Channel tiling bounds per-step VMEM at production channel counts.
    tc = 128 if (c > 128 and c % 128 == 0) else c
    nc = c // tc
    est = (hi * wi * tc + ho * wo * tc) * 4 * 3 + (ho * hi + wo * wi) * 4
    return pl.pallas_call(
        _upsample_kernel,
        out_shape=jax.ShapeDtypeStruct((n, ho, wo, c), out_dtype),
        grid_spec=pltpu.PrefetchScalarGridSpec(
            num_scalar_prefetch=0,
            grid=(n, nc),
            in_specs=[
                pl.BlockSpec((1, hi, wi, tc), lambda i, k: (i, 0, 0, k)),
                pl.BlockSpec((ho, hi), lambda i, k: (0, 0)),
                pl.BlockSpec((wo, wi), lambda i, k: (0, 0)),
            ],
            out_specs=pl.BlockSpec((1, ho, wo, tc), lambda i, k: (i, 0, 0, k)),
        ),
        compiler_params=pltpu.CompilerParams(
            dimension_semantics=("parallel", "parallel"),
            vmem_limit_bytes=_vmem_limit(est),
        ),
    )(x_nhwc, a, b)


# ---------------------------------------------------------------------------
# Fused (concat + pad + conv3x3+BN+LeakyReLU + pad + conv3x3+BN+LeakyReLU)
# H-tiled Pallas kernel with manual halo DMA.  Only a TH(+halo)-row window of
# each input is ever resident in VMEM; the intermediate activation never
# touches HBM.
# ---------------------------------------------------------------------------
def fused_double_conv(x2_nhwc, x1_nhwc, w1a, w1b, b1, w2, b2, *,
                      circular_padding, compute_dtype, out_dtype, tile_h=None):
    n, H, W, C2 = x2_nhwc.shape
    C1 = x1_nhwc.shape[-1]
    Cout = w1a.shape[-1]
    assert x1_nhwc.shape[:3] == (n, H, W), (x1_nhwc.shape, x2_nhwc.shape)
    assert w1a.shape == (9, C2, Cout) and w1b.shape == (9, C1, Cout)
    assert w2.shape == (9, Cout, Cout)

    if tile_h is None:
        tile_h = next((th for th in (64, 32, 16, 8) if H % th == 0), H)
    TH = int(tile_h)
    if H % TH != 0:
        raise ValueError(f"tile_h={TH} must divide H={H}")
    NH = H // TH
    if NH > 1 and TH < 2:
        raise ValueError("tile_h must be >= 2 when the image is H-tiled")
    RB1 = TH + 2          # conv1 produces TH+2 "mid" rows per tile (1-row halo for conv2)
    cdt = jnp.dtype(compute_dtype)
    odt = jnp.dtype(out_dtype)

    def kernel(x2_hbm, x1_hbm, w1a_ref, w1b_ref, b1_ref, w2_ref, b2_ref,
               o_ref, x2p_ref, x1p_ref, mid_ref, sems):
        i = pl.program_id(0)
        h = pl.program_id(1)
        r0 = pl.multiple_of(h * TH, TH)

        # ---- 1. zero only the cells the DMAs will not write ------------------
        # (W pad columns for zero-padding; 2 halo rows at the image boundary)
        if not circular_padding:
            x2p_ref[:, 0:1, :] = jnp.zeros((TH + 4, 1, C2), cdt)
            x2p_ref[:, W + 1:W + 2, :] = jnp.zeros((TH + 4, 1, C2), cdt)
            x1p_ref[:, 0:1, :] = jnp.zeros((TH + 4, 1, C1), cdt)
            x1p_ref[:, W + 1:W + 2, :] = jnp.zeros((TH + 4, 1, C1), cdt)

        @pl.when(h == 0)
        def _():          # conv1's H zero-padding above the image
            x2p_ref[0:2, :, :] = jnp.zeros((2, W + 2, C2), cdt)
            x1p_ref[0:2, :, :] = jnp.zeros((2, W + 2, C1), cdt)

        @pl.when(h == NH - 1)
        def _():          # conv1's H zero-padding below the image
            x2p_ref[TH + 2:TH + 4, :, :] = jnp.zeros((2, W + 2, C2), cdt)
            x1p_ref[TH + 2:TH + 4, :, :] = jnp.zeros((2, W + 2, C1), cdt)

        # ---- 2. DMA the TH-row tile (+ up to 2 halo rows each side) ----------
        def tile_copies(src_hbm, dst_ref, sbase):
            main = pltpu.make_async_copy(
                src_hbm.at[i, pl.ds(r0, TH)],
                dst_ref.at[pl.ds(2, TH), pl.ds(1, W)],
                sems.at[sbase])
            top = pltpu.make_async_copy(
                src_hbm.at[i, pl.ds(r0 - 2, 2)],
                dst_ref.at[pl.ds(0, 2), pl.ds(1, W)],
                sems.at[sbase + 1])
            bot = pltpu.make_async_copy(
                src_hbm.at[i, pl.ds(r0 + TH, 2)],
                dst_ref.at[pl.ds(TH + 2, 2), pl.ds(1, W)],
                sems.at[sbase + 2])
            return main, top, bot

        def start(copies):
            main, top, bot = copies
            main.start()

            @pl.when(h > 0)
            def _():
                top.start()

            @pl.when(h < NH - 1)
            def _():
                bot.start()

        def wait(copies):
            main, top, bot = copies
            main.wait()

            @pl.when(h > 0)
            def _():
                top.wait()

            @pl.when(h < NH - 1)
            def _():
                bot.wait()

        x2_copies = tile_copies(x2_hbm, x2p_ref, 0)
        x1_copies = tile_copies(x1_hbm, x1p_ref, 3)
        start(x2_copies)
        start(x1_copies)
        # TODO(synk): cross-step double-buffering of these tile DMAs (prefetch tile j+1
        #             while computing tile j) would hide the halo DMA latency fully.
        wait(x2_copies)
        wait(x1_copies)

        # ---- 3. circular W padding of the (virtually concatenated) input -----
        if circular_padding:
            x2p_ref[:, 0:1, :] = x2p_ref[:, W:W + 1, :]
            x2p_ref[:, W + 1:W + 2, :] = x2p_ref[:, 1:2, :]
            x1p_ref[:, 0:1, :] = x1p_ref[:, W:W + 1, :]
            x1p_ref[:, W + 1:W + 2, :] = x1p_ref[:, 1:2, :]

        # ---- 4. 3x3 conv as 9 accumulated channel-contraction MXU dots -------
        # (bounded temporaries: one shifted window live at a time, f32 accumulation)
        def conv3x3(sources, rows):
            acc = None
            for src_ref, cin, w_ref in sources:
                for dy in range(3):
                    for dx in range(3):
                        patch = src_ref[dy:dy + rows, dx:dx + W, :].reshape(rows * W, cin)
                        part = jnp.dot(patch, w_ref[dy * 3 + dx],
                                       preferred_element_type=jnp.float32)
                        acc = part if acc is None else acc + part
            return acc

        # conv1 (BN folded) + LeakyReLU over TH+2 rows; the concat is realized by
        # splitting the weights over the x2 / x1 channel halves.
        acc1 = conv3x3([(x2p_ref, C2, w1a_ref), (x1p_ref, C1, w1b_ref)], RB1)
        y1 = acc1 + b1_ref[...]
        y1 = jnp.maximum(y1, 0.01 * y1)                    # LeakyReLU(0.01)
        mid_ref[0:RB1, 1:W + 1, :] = y1.reshape(RB1, W, Cout).astype(cdt)

        # ---- 5. pad the conv1 activation for conv2 ---------------------------
        if circular_padding:
            mid_ref[:, 0:1, :] = mid_ref[:, W:W + 1, :]
            mid_ref[:, W + 1:W + 2, :] = mid_ref[:, 1:2, :]
        else:
            mid_ref[:, 0:1, :] = jnp.zeros((RB1, 1, Cout), cdt)
            mid_ref[:, W + 1:W + 2, :] = jnp.zeros((RB1, 1, Cout), cdt)

        # rows outside the image must be ZERO for conv2 (activation zero-padding),
        # not conv1 applied to zero-padded input.
        @pl.when(h == 0)
        def _():
            mid_ref[0:1, :, :] = jnp.zeros((1, W + 2, Cout), cdt)

        @pl.when(h == NH - 1)
        def _():
            mid_ref[RB1 - 1:RB1, :, :] = jnp.zeros((1, W + 2, Cout), cdt)

        # ---- 6. conv2 (BN folded) + LeakyReLU + lane-dense store -------------
        acc2 = conv3x3([(mid_ref, Cout, w2_ref)], TH)
        y2 = acc2 + b2_ref[...]
        y2 = jnp.maximum(y2, 0.01 * y2)
        o_ref[0] = y2.reshape(TH, W * Cout).astype(o_ref.dtype)

    flops = 2 * n * H * W * 9 * (C2 + C1) * Cout + 2 * n * H * W * 9 * Cout * Cout
    bytes_accessed = int(
        x2_nhwc.size * x2_nhwc.dtype.itemsize
        + x1_nhwc.size * x1_nhwc.dtype.itemsize
        + n * H * W * Cout * odt.itemsize
        + (w1a.size + w1b.size + w2.size) * cdt.itemsize)

    # VMEM footprint estimate -> limit with headroom (never the full 64 MiB of v7x)
    scratch_bytes = ((TH + 4) * (W + 2) * (C2 + C1)
                     + (TH + 2) * (W + 2) * Cout) * cdt.itemsize
    weights_bytes = 2 * ((9 * (C2 + C1) * Cout + 9 * Cout * Cout) * cdt.itemsize
                         + 2 * Cout * 4)
    out_bytes = 2 * TH * W * Cout * odt.itemsize
    temp_bytes = (RB1 * W * Cout + TH * W * Cout) * 4 \
        + 2 * RB1 * W * max(C2, C1, Cout) * cdt.itemsize
    est = scratch_bytes + weights_bytes + out_bytes + temp_bytes

    return pl.pallas_call(
        kernel,
        out_shape=jax.ShapeDtypeStruct((n, H, W * Cout), out_dtype),
        grid_spec=pltpu.PrefetchScalarGridSpec(
            num_scalar_prefetch=0,
            grid=(n, NH),
            in_specs=[
                pl.BlockSpec(memory_space=pl.ANY),      # x2 stays in HBM, DMA'd per tile
                pl.BlockSpec(memory_space=pl.ANY),      # upsampled x1 stays in HBM
                pl.BlockSpec((9, C2, Cout), lambda i, j: (0, 0, 0)),
                pl.BlockSpec((9, C1, Cout), lambda i, j: (0, 0, 0)),
                pl.BlockSpec((1, Cout), lambda i, j: (0, 0)),
                pl.BlockSpec((9, Cout, Cout), lambda i, j: (0, 0, 0)),
                pl.BlockSpec((1, Cout), lambda i, j: (0, 0)),
            ],
            out_specs=pl.BlockSpec((1, TH, W * Cout), lambda i, j: (i, j, 0)),
            scratch_shapes=[
                pltpu.VMEM((TH + 4, W + 2, C2), compute_dtype),   # padded x2 tile
                pltpu.VMEM((TH + 4, W + 2, C1), compute_dtype),   # padded x1u tile
                pltpu.VMEM((TH + 2, W + 2, Cout), compute_dtype), # padded conv1 output
                pltpu.SemaphoreType.DMA((6,)),
            ],
        ),
        compiler_params=pltpu.CompilerParams(
            dimension_semantics=("parallel", "parallel"),
            vmem_limit_bytes=_vmem_limit(est),
        ),
        cost_estimate=pl.CostEstimate(
            flops=flops, transcendentals=0, bytes_accessed=bytes_accessed),
    )(x2_nhwc, x1_nhwc, w1a, w1b, b1, w2, b2)


# ---------------------------------------------------------------------------
# Module forward (glue in plain JAX, hot path in Pallas)
# ---------------------------------------------------------------------------
def _fold_bn_into_conv(w_hwio, conv_b, gamma, beta, mean, var, eps=1e-5):
    scale = gamma / jnp.sqrt(var + eps)
    w_folded = w_hwio * scale[None, None, None, :]
    b_folded = beta + (conv_b - mean) * scale
    return w_folded, b_folded


def up_forward(x1_nchw, x2_nchw, params, circular_padding=False,
               compute_dtype=jnp.bfloat16, out_dtype=None, tile_h=None):
    out_dtype = compute_dtype if out_dtype is None else out_dtype

    # NCHW -> NHWC (channels last for the TPU kernels); cast skip to compute dtype.
    x1 = jnp.transpose(x1_nchw, (0, 2, 3, 1))
    x2 = jnp.transpose(x2_nchw, (0, 2, 3, 1)).astype(compute_dtype)

    # Upsample(scale=2, bilinear, align_corners=True), emitted in the compute dtype.
    # TODO(synk): fuse the upsample per-tile into fused_double_conv to skip this HBM
    #             intermediate entirely (largest remaining mem-bound win on v5e/v6e).
    x1u = bilinear_upsample_x2(x1, out_dtype=compute_dtype)

    diff_y = x2.shape[1] - x1u.shape[1]
    diff_x = x2.shape[2] - x1u.shape[2]
    if diff_y != 0 or diff_x != 0:
        # TODO(synk): fold this (rare, odd-size) alignment pad into the kernel's in-VMEM pad.
        x1u = jnp.pad(
            x1u,
            ((0, 0), (diff_y // 2, diff_y - diff_y // 2),
             (diff_x // 2, diff_x - diff_x // 2), (0, 0)))

    c2 = x2.shape[-1]
    c1 = x1u.shape[-1]
    cout = params["w1"].shape[-1]

    # Fold inference BatchNorm into the conv weights/biases in f32; cast at the end.
    # TODO(synk): training-mode (batch-statistics) BatchNorm not implemented.
    w1f, b1f = _fold_bn_into_conv(params["w1"], params["b1"], params["g1"],
                                  params["be1"], params["m1"], params["v1"])
    w2f, b2f = _fold_bn_into_conv(params["w2"], params["b2"], params["g2"],
                                  params["be2"], params["m2"], params["v2"])
    # torch.cat([x2, x1], dim=1): the first c2 input channels of conv1 act on x2 and
    # the rest on the upsampled x1, so the weights are split and the concat never
    # materializes (in HBM or in VMEM).
    w1a = w1f[:, :, :c2, :].reshape(9, c2, cout).astype(compute_dtype)
    w1b = w1f[:, :, c2:, :].reshape(9, c1, cout).astype(compute_dtype)
    w2r = w2f.reshape(9, cout, cout).astype(compute_dtype)
    b1r = b1f.reshape(1, cout).astype(jnp.float32)
    b2r = b2f.reshape(1, cout).astype(jnp.float32)

    out = fused_double_conv(x2, x1u, w1a, w1b, b1r, w2r, b2r,
                            circular_padding=circular_padding,
                            compute_dtype=compute_dtype, out_dtype=out_dtype,
                            tile_h=tile_h)
    n, H, W = x2.shape[0], x2.shape[1], x2.shape[2]
    out = out.reshape(n, H, W, cout)
    return jnp.transpose(out, (0, 3, 1, 2))              # back to NCHW


# ---------------------------------------------------------------------------
# Pure-JAX reference of the whole `up` forward (correctness check)
# ---------------------------------------------------------------------------
def _up_ref(x1_nchw, x2_nchw, params, circular_padding=False):
    x1 = jnp.transpose(x1_nchw, (0, 2, 3, 1)).astype(jnp.float32)
    x2 = jnp.transpose(x2_nchw, (0, 2, 3, 1)).astype(jnp.float32)
    n, hi, wi, c = x1.shape
    a = jnp.asarray(_interp_matrix(2 * hi, hi))
    b = jnp.asarray(_interp_matrix(2 * wi, wi))
    x1u = jnp.einsum("ip,jq,npqc->nijc", a, b, x1)
    dy = x2.shape[1] - x1u.shape[1]
    dx = x2.shape[2] - x1u.shape[2]
    x1u = jnp.pad(x1u, ((0, 0), (dy // 2, dy - dy // 2),
                        (dx // 2, dx - dx // 2), (0, 0)))
    x = jnp.concatenate([x2, x1u], axis=-1)

    wmode = "wrap" if circular_padding else "constant"

    def pad_hw(t):
        t = jnp.pad(t, ((0, 0), (1, 1), (0, 0), (0, 0)))                  # H: zeros
        return jnp.pad(t, ((0, 0), (0, 0), (1, 1), (0, 0)), mode=wmode)   # W: zero/circ

    def block(t, w, bb, g, be, m, v):
        y = lax.conv_general_dilated(pad_hw(t), w, (1, 1), "VALID",
                                     dimension_numbers=("NHWC", "HWIO", "NHWC"))
        y = y + bb
        y = (y - m) / jnp.sqrt(v + 1e-5) * g + be
        return jnp.where(y > 0, y, 0.01 * y)

    x = block(x, params["w1"], params["b1"], params["g1"], params["be1"],
              params["m1"], params["v1"])
    x = block(x, params["w2"], params["b2"], params["g2"], params["be2"],
              params["m2"], params["v2"])
    return jnp.transpose(x, (0, 3, 1, 2))


# ---------------------------------------------------------------------------
if __name__ == "__main__":
    # UNet "up" block shapes:
    #   x1: (N, in_ch//2, H, W)       -- low-res feature to be upsampled
    #   x2: (N, in_ch//2, 2H, 2W)     -- skip connection
    N, in_ch, out_ch = 2, 8, 8
    H1, W1 = 16, 16
    x1_shape = (N, in_ch // 2, H1, W1)            # (2, 4, 16, 16)
    x2_shape = (N, in_ch // 2, 2 * H1, 2 * W1)    # (2, 4, 32, 32)

    key = jax.random.PRNGKey(0)
    ks = jax.random.split(key, 14)
    x1 = jax.random.normal(ks[0], x1_shape, jnp.float32)
    x2 = jax.random.normal(ks[1], x2_shape, jnp.float32)

    params = {
        "w1": 0.1 * jax.random.normal(ks[2], (3, 3, in_ch, out_ch), jnp.float32),
        "b1": 0.1 * jax.random.normal(ks[3], (out_ch,), jnp.float32),
        "g1": 1.0 + 0.1 * jax.random.normal(ks[4], (out_ch,), jnp.float32),
        "be1": 0.1 * jax.random.normal(ks[5], (out_ch,), jnp.float32),
        "m1": 0.1 * jax.random.normal(ks[6], (out_ch,), jnp.float32),
        "v1": jax.random.uniform(ks[7], (out_ch,), jnp.float32, 0.5, 1.5),
        "w2": 0.1 * jax.random.normal(ks[8], (3, 3, out_ch, out_ch), jnp.float32),
        "b2": 0.1 * jax.random.normal(ks[9], (out_ch,), jnp.float32),
        "g2": 1.0 + 0.1 * jax.random.normal(ks[10], (out_ch,), jnp.float32),
        "be2": 0.1 * jax.random.normal(ks[11], (out_ch,), jnp.float32),
        "m2": 0.1 * jax.random.normal(ks[12], (out_ch,), jnp.float32),
        "v2": jax.random.uniform(ks[13], (out_ch,), jnp.float32, 0.5, 1.5),
    }

    ref = np.asarray(_up_ref(x1, x2, params, circular_padding=False))
    ref_circ = np.asarray(_up_ref(x1, x2, params, circular_padding=True))

    # (1) f32 compute path, H-tiled (exercises first / middle / last tiles) -- tight.
    out_f32 = jax.block_until_ready(
        up_forward(x1, x2, params, circular_padding=False,
                   compute_dtype=jnp.float32, tile_h=8))
    assert out_f32.shape == (N, out_ch, 2 * H1, 2 * W1), out_f32.shape
    np.testing.assert_allclose(np.asarray(out_f32), ref, rtol=1e-4, atol=1e-4)

    # (2) circular W-padding variant (double_conv_circular), f32 -- tight.
    out_circ = jax.block_until_ready(
        up_forward(x1, x2, params, circular_padding=True,
                   compute_dtype=jnp.float32, tile_h=8))
    np.testing.assert_allclose(np.asarray(out_circ), ref_circ, rtol=1e-4, atol=1e-4)

    # (3) bf16 MXU path (production default, bf16 output); accumulation stays f32.
    out_bf16 = jax.block_until_ready(
        up_forward(x1, x2, params, circular_padding=False,
                   compute_dtype=jnp.bfloat16))
    np.testing.assert_allclose(np.asarray(out_bf16, dtype=np.float32), ref,
                               rtol=1e-1, atol=1e-1)

    print("KERNEL_OK")
</pallas_src>

<mosaic_0001>
module attributes {stable_mosaic.version = 11 : i64} {
  func.func @_upsample_kernel(%arg0: i32, %arg1: i32, %arg2: memref<1x16x16x4xf32, #tpu.memory_space<vmem>>, %arg3: memref<32x16xf32, #tpu.memory_space<vmem>>, %arg4: memref<32x16xf32, #tpu.memory_space<vmem>>, %arg5: memref<1x32x32x4xf32, #tpu.memory_space<vmem>>) attributes {dimension_semantics = [#tpu.dimension_semantics<parallel>, #tpu.dimension_semantics<parallel>], iteration_bounds = array<i64: 2, 1>, scalar_prefetch = 0 : i64, scratch_operands = 0 : i64, tpu.core_type = #tpu.core_type<tc>, window_params = [{transform_indices = @transform_0, window_bounds = array<i64: 1, 16, 16, 4>}, {pipeline_mode = #tpu.pipeline_mode<synchronous>, transform_indices = @transform_1, window_bounds = array<i64: 32, 16>}, {pipeline_mode = #tpu.pipeline_mode<synchronous>, transform_indices = @transform_2, window_bounds = array<i64: 32, 16>}, {transform_indices = @transform_3, window_bounds = array<i64: 1, 32, 32, 4>}]} {
    %c0 = arith.constant 0 : index
    %c0_0 = arith.constant 0 : index
    %c0_1 = arith.constant 0 : index
    %c0_2 = arith.constant 0 : index
    %0 = vector.load %arg2[%c0, %c0_0, %c0_1, %c0_2] : memref<1x16x16x4xf32, #tpu.memory_space<vmem>>, vector<1x16x16x4xf32>
    %1 = vector.shape_cast %0 : vector<1x16x16x4xf32> to vector<16x16x4xf32>
    %c0_3 = arith.constant 0 : index
    %c0_4 = arith.constant 0 : index
    %2 = vector.load %arg3[%c0_3, %c0_4] : memref<32x16xf32, #tpu.memory_space<vmem>>, vector<32x16xf32>
    "tpu.trace_start"() <{level = 10 : i32, message = "ip,pqc->iqc"}> : () -> ()
    %cst = arith.constant dense<0.000000e+00> : vector<32x16x4xf32>
    %3 = tpu.matmul %2, %1, %cst {dimension_numbers = #tpu.dot_dimension_numbers<[1], [0], [0], [1, 2], [0, 0, 1, 1, 1, 2], [], []>} : vector<32x16xf32>, vector<16x16x4xf32>, vector<32x16x4xf32> -> vector<32x16x4xf32>
    "tpu.trace_stop"() : () -> ()
    %c0_5 = arith.constant 0 : index
    %c0_6 = arith.constant 0 : index
    %4 = vector.load %arg4[%c0_5, %c0_6] : memref<32x16xf32, #tpu.memory_space<vmem>>, vector<32x16xf32>
    "tpu.trace_start"() <{level = 10 : i32, message = "jq,iqc->ijc"}> : () -> ()
    %cst_7 = arith.constant dense<0.000000e+00> : vector<32x4x32xf32>
    %5 = tpu.matmul %3, %4, %cst_7 {dimension_numbers = #tpu.dot_dimension_numbers<[1], [1], [0, 2], [0], [0, 0, 0, 2, 1, 0], [], []>} : vector<32x16x4xf32>, vector<32x16xf32>, vector<32x4x32xf32> -> vector<32x4x32xf32>
    %6 = tpu.transpose %5, [0, 2, 1] : vector<32x4x32xf32> -> vector<32x32x4xf32>
    "tpu.trace_stop"() : () -> ()
    %c0_8 = arith.constant 0 : index
    %c0_9 = arith.constant 0 : index
    %c0_10 = arith.constant 0 : index
    %c0_11 = arith.constant 0 : index
    %7 = vector.load %arg5[%c0_8, %c0_9, %c0_10, %c0_11] : memref<1x32x32x4xf32, #tpu.memory_space<vmem>>, vector<1x32x32x4xf32>
    %8 = vector.shape_cast %7 : vector<1x32x32x4xf32> to vector<32x32x4xf32>
    %9 = vector.shape_cast %6 : vector<32x32x4xf32> to vector<1x32x32x4xf32>
    tpu.vector_store %arg5[%c0_8, %c0_9, %c0_10, %c0_11], %9 {strides = array<i32>} : memref<1x32x32x4xf32, #tpu.memory_space<vmem>>, vector<1x32x32x4xf32>,
    return
  }
  func.func @transform_0(%arg0: i32, %arg1: i32) -> (i32, i32, i32, i32) {
    %c0_i32 = arith.constant 0 : i32
    %c0_i32_0 = arith.constant 0 : i32
    %c0_i32_1 = arith.constant 0 : i32
    return %arg0, %c0_i32, %c0_i32_0, %arg1 : i32, i32, i32, i32
  }
  func.func @transform_1(%arg0: i32, %arg1: i32) -> (i32, i32) {
    %c0_i32 = arith.constant 0 : i32
    %c0_i32_0 = arith.constant 0 : i32
    %c0_i32_1 = arith.constant 0 : i32
    return %c0_i32, %c0_i32_0 : i32, i32
  }
  func.func @transform_2(%arg0: i32, %arg1: i32) -> (i32, i32) {
    %c0_i32 = arith.constant 0 : i32
    %c0_i32_0 = arith.constant 0 : i32
    %c0_i32_1 = arith.constant 0 : i32
    return %c0_i32, %c0_i32_0 : i32, i32
  }
  func.func @transform_3(%arg0: i32, %arg1: i32) -> (i32, i32, i32, i32) {
    %c0_i32 = arith.constant 0 : i32
    %c0_i32_0 = arith.constant 0 : i32
    %c0_i32_1 = arith.constant 0 : i32
    return %arg0, %c0_i32, %c0_i32_0, %arg1 : i32, i32, i32, i32
  }
}

</mosaic_0001>

<bundles_post_ra>
// kernel: tpu_custom_call.1
= control target key start
LH: loop header
LB: loop body
LE: loop exit
PB: predicated region body
PF: predicated region fallthrough
CT: control target
= control target key end

     0   :  { %s3906_s12 = smov 0   ;;  %s3908_s13 = smov 0   ;;  %s5094_s0 = inlined_call_operand.vmem [shape: f32[2,16,16,4], index: 0, kind: input, shape index: {}]   ;;  %s5095_s1 = inlined_call_operand.vmem [shape: f32[32,16], index: 1, kind: input, shape index: {}]   ;;  %s5096_s2 = inlined_call_operand.vmem [shape: f32[32,16], index: 2, kind: input, shape index: {}]   ;;  %s5097_s3 = inlined_call_operand.vmem [shape: f32[2,32,32,4], index: 3, kind: output, shape index: {}]  }
   0x1   :  { %s3910_s14 = smov 0  }
   0x2 LB: > { %s25_s15 = sadd.s32 1, %s3847_s13  ;;  %p3652_p0 = scmp.ge.s32.totalorder %s3851_s14, 1  ;;  %s3851_s14 = sphi %s3910_s14, %s13_s14   ;;  %s3847_s13 = sphi %s3908_s13, %s5099_s13   ;;  %s3843_s12 = sphi %s3906_s12, %s5098_s12  }
   0x3   : > { %p27_p1 = scmp.ge.s32.totalorder %s25_s15, 2  ;;  %p156_p2 = scmp.lt.s32.totalorder %s3851_s14, 3 }
   0x5   : > { %s5101_s15 = smov (%p27_p1, %s25_s15), 0  ;;  %p157_p3 = pnand %p3652_p0, %p156_p2 }
   0x6   : > { %p186_p4 = scmp.lt.s32.totalorder (!%p157_p3), %s3843_s12, 1  ;;  %s3855_s20 = smov (!%p157_p3), 4  }
   0x7   : > { %160 = sbr.rel (%p157_p3) target bundleno = 1694 (0x69e), region = 32  ;;  %s3856_s21 = smov (!%p157_p3), 12  }
   0x8   : > { %s3857_s22 = smov (!%p157_p3), 8   ;;  %s3858_s23 = smov (!%p157_p3), 16  }
   0x9   : > { %s3859_s24 = smov (!%p157_p3), 28   ;;  %s3860_s25 = smov (!%p157_p3), 32  }
   0xa   : > { %s3861_s26 = smov (!%p157_p3), 20   ;;  %s3862_s27 = smov (!%p157_p3), 40  }
   0xb   : > { %s3863_s28 = smov (!%p157_p3), 44   ;;  %s3864_s29 = smov (!%p157_p3), 24  }
   0xc   : > { %s5103_s12 = smov (!%p186_p4, %s3843_s12), 1  ;;  %v3853_v0 = vmov 1983009808   ;;  %v3854_v2 = vmov 1934713408   ;;  %vm239_vm0 = vcmask 1047556  }
   0xd   : > { %v244_v1 = vunpack.c.l.s4 %v3853_v0  ;;  %s3683_s16 = sshll.u32 %s5103_s12, 8  ;;  %v292_v3 = vunpack.c.l.s4 %v3854_v2  ;;  %s3865_s30 = smov 52   ;;  %vm807_vm1 = vcmask 31744   ;;  %vm810_vm2 = vcmask 64512  }
   0xe   : > { %s3930_s19 = scalar_lea.vmem %s5094_s0, %s3683_s16  ;;  %s3867_s4 = smov 56   ;;  %vm813_vm3 = vcmask 97280   ;;  %vm816_vm4 = vcmask 130048   ;;  %vm819_vm5 = vcmask 162816   ;;  %vm822_vm6 = vcmask 195584  }
   0xf   : > { %v3933_v4 = vld [vmem:[%s3930_s19] sm:$0xff]  ;;  %v3936_v5 = vld [vmem:[%s3930_s19 + $0x10] sm:$0xff]  ;;  %v3951_v11 = vunpack.c.0.s8 %v244_v1  ;;  %v3965_v18 = vunpack.c.0.s8 %v292_v3  ;;  %s3868_s5 = smov 36   ;;  %s3869_s6 = smov 48   ;;  %vm825_vm7 = vcmask 228352   ;;  %vm828_vm8 = vcmask 261120  }
  0x10   : > { %v3939_v6 = vld [vmem:[%s3930_s19 + $0x20] sm:$0xff]  ;;  %v3942_v7 = vld [vmem:[%s3930_s19 + $0x30] sm:$0xff]  ;;  %v241_v15 = vrot.slane %v3933_v4, 4  ;;  %v253_v17 = vrot.slane %v3936_v5, 4  ;;  %s3870_s7 = smov 60   ;;  %vm831_vm9 = vcmask 293888  }
  0x11   : > { %v3945_v8 = vld [vmem:[%s3930_s19 + $0x40] sm:$0xff]  ;;  %v3948_v9 = vld [vmem:[%s3930_s19 + $0x50] sm:$0xff]  ;;  %v238_v10 = vrot.slane %v3939_v6, 4  ;;  %v251_v16 = vrot.slane %v3942_v7, 4  ;;  %vm834_vm10 = vcmask 326656   ;;  %vm837_vm11 = vcmask 359424  }
  0x12   : > { %v3954_v12 = vld [vmem:[%s3930_s19 + $0x60] sm:$0xff]  ;;  %v3957_v13 = vld [vmem:[%s3930_s19 + $0x70] sm:$0xff]  ;;  %v265_v24 = vrot.slane %v3945_v8, 4  ;;  %v277_v28 = vrot.slane %v3948_v9, 4  ;;  %vm840_vm12 = vcmask 392192   ;;  %vm843_vm13 = vcmask 424960  }
  0x13   : > { %v3960_v14 = vld [vmem:[%s3930_s19 + $0x80] sm:$0xff]  ;;  %v3968_v19 = vld [vmem:[%s3930_s19 + $0x90] sm:$0xff]  ;;  %v240_v22 = vsel %vm239_vm0, %v238_v10, %v3933_v4  ;;  %v263_v23 = vrot.slane %v3954_v12, 4  ;;  %v275_v25 = vrot.slane %v3957_v13, 4  ;;  %v252_v27 = vsel %vm239_vm0, %v251_v16, %v3936_v5 }
  0x14   : > { %v3971_v20 = vld [vmem:[%s3930_s19 + $0xa0] sm:$0xff]  ;;  %v3974_v21 = vld [vmem:[%s3930_s19 + $0xb0] sm:$0xff]  ;;  %v246_v32 = vperm.slane %v240_v22, %v3951_v11  ;;  %v258_v33 = vperm.slane %v252_v27, %v3951_v11  ;;  %v353_v47 = vrot.slane %v3960_v14, 4  ;;  %v365_v48 = vrot.slane %v3968_v19, 4 }
  0x15   : > { %v3982_v26 = vld [vmem:[%s3930_s19 + $0xe0] sm:$0xff]  ;;  %v351_v29 = vrot.slane %v3971_v20, 4  ;;  %v363_v30 = vrot.slane %v3974_v21, 4  ;;  %v3990_v31 = vld [vmem:[%s3930_s19 + $0xf0] sm:$0xff]  ;;  %v264_v34 = vsel %vm239_vm0, %v263_v23, %v3945_v8  ;;  %v276_v35 = vsel %vm239_vm0, %v275_v25, %v3948_v9 }
  0x16   : > { %v3999_v36 = vld [vmem:[%s3930_s19 + $0xc0] sm:$0xff]  ;;  %v270_v37 = vperm.slane %v264_v34, %v3951_v11  ;;  %v282_v38 = vperm.slane %v276_v35, %v3951_v11  ;;  %v4008_v41 = vld [vmem:[%s3930_s19 + $0xd0] sm:$0xff]  ;;  %v287_v42 = vrot.slane %v258_v33, 4  ;;  %v375_v45 = vrot.slane %v3982_v26, 4 }
  0x17   : > { %v352_v39 = vsel %vm239_vm0, %v351_v29, %v3960_v14  ;;  %v364_v40 = vsel %vm239_vm0, %v363_v30, %v3968_v19  ;;  %v387_v49 = vrot.slane %v3990_v31, 4  ;;  %v289_v53 = vrot.slane %v246_v32, 4 }
  0x18   : > { %v358_v43 = vperm.slane %v352_v39, %v3951_v11  ;;  %v370_v44 = vperm.slane %v364_v40, %v3951_v11  ;;  %v311_v46 = vrot.slane %v282_v38, 4  ;;  %v288_v50 = vsel %vm239_vm0, %v287_v42, %v246_v32 }
  0x19   : > { %v376_v51 = vsel %vm239_vm0, %v375_v45, %v3999_v36  ;;  %v4020_v54 = vperm.slane %v288_v50, %v3965_v18  ;;  %v388_v57 = vsel %vm239_vm0, %v387_v49, %v4008_v41  ;;  %v290_v61 = vsel %vm239_vm0, %v258_v33, %v289_v53 }
  0x1a   : > { %v399_v52 = vrot.slane %v370_v44, 4  ;;  %v312_v55 = vsel %vm239_vm0, %v311_v46, %v270_v37  ;;  %v382_v56 = vperm.slane %v376_v51, %v3951_v11  ;;  %v394_v59 = vperm.slane %v388_v57, %v3951_v11 }
  0x1b   : > { %v4027_v58 = vperm.slane %v312_v55, %v3965_v18  ;;  %v337_v62 = vrot.slane %v4020_v54, 4  ;;  %v298_v0 = vperm.slane %v290_v61, %v3965_v18  ;;  %v313_v1 = vrot.slane %v270_v37, 4 }
  0x1c   : > { %v400_v60 = vsel %vm239_vm0, %v399_v52, %v358_v43  ;;  %v377_v2 = vrot.slane %v3999_v36, 4  ;;  %v423_v3 = vrot.slane %v394_v59, 4  ;;  %v401_v10 = vrot.slane %v358_v43, 4 }
  0x1d   : > { %v4034_v63 = vperm.slane %v400_v60, %v3965_v18  ;;  %v425_v14 = vrot.slane %v382_v56, 4  ;;  %v338_v16 = vsel %vm239_vm0, %v4027_v58, %v337_v62  ;;  %v314_v22 = vsel %vm239_vm0, %v282_v38, %v313_v1 }
  0x1e   : > { %v341_v23 = vrot.slane %v298_v0, 4  ;;  %v424_v25 = vsel %vm239_vm0, %v423_v3, %v382_v56  ;;  %v322_v27 = vperm.slane %v314_v22, %v3965_v18  ;;  %v402_v29 = vsel %vm239_vm0, %v370_v44, %v401_v10  ;;  %v4108_v3 = vld [vmem:[%s3930_s19 + $0x28] sm:$0xff]  ;;  %v4119_v22 = vld [vmem:[%s3930_s19 + $0x38] sm:$0xff] }
  0x1f   : > { %v449_v19 = vrot.slane %v4034_v63, 4  ;;  %v426_v30 = vsel %vm239_vm0, %v394_v59, %v425_v14  ;;  %v4047_v32 = vperm.slane %v424_v25, %v3965_v18  ;;  %v410_v33 = vperm.slane %v402_v29, %v3965_v18 }
  0x20   : > { %v434_v34 = vperm.slane %v426_v30, %v3965_v18  ;;  %v242_v35 = vsel %vm239_vm0, %v3939_v6, %v241_v15  ;;  %v389_v36 = vrot.slane %v4008_v41, 4  ;;  %v339_v37 = vrot.slane %v322_v27, 4  ;;  %v4131_v30 = vld [vmem:[%s3930_s19 + $0x8] sm:$0xff] }
  0x21   : > { %v342_v38 = vsel %vm239_vm0, %v322_v27, %v341_v23  ;;  %v254_v39 = vsel %vm239_vm0, %v3942_v7, %v253_v17  ;;  %v450_v40 = vsel %vm239_vm0, %v4047_v32, %v449_v19  ;;  %v453_v43 = vrot.slane %v410_v33, 4 }
  0x22   : > { %v451_v42 = vrot.slane %v434_v34, 4  ;;  %v250_v4 = vperm.slane %v242_v35, %v3951_v11  ;;  %v3754_v44 = vpack.i.bf16 %v450_v40, %v338_v16  ;;  %v340_v6 = vsel %vm239_vm0, %v339_v37, %v298_v0  ;;  %v4145_v37 = vld [vmem:[%s3930_s19 + $0x18] sm:$0xff] }
  0x23   : > { %v262_v15 = vperm.slane %v254_v39, %v3951_v11  ;;  %v266_v5 = vsel %vm239_vm0, %v3954_v12, %v265_v24  ;;  %v454_v41 = vsel %vm239_vm0, %v434_v34, %v453_v43  ;;  %v278_v45 = vsel %vm239_vm0, %v3957_v13, %v277_v28  ;;  %v4137_v34 = vld [vmem:[%s3930_s19 + $0x78] sm:$0xff] }
  0x24   : > { %v452_v7 = vsel %vm239_vm0, %v451_v42, %v410_v33  ;;  %v274_v17 = vperm.slane %v266_v5, %v3951_v11  ;;  %3755 = vrot.lane.b32.xlu0 %v3754_v44, %s3855_s20  ;;  %v3764_v46 = vpack.i.bf16 %v454_v41, %v342_v38  ;;  %v286_v8 = vperm.slane %v278_v45, %v3951_v11  ;;  %v4134_v33 = vld [vmem:[%s3930_s19 + $0x68] sm:$0xff] }
  0x25   : > { %v3759_v49 = vpack.i.bf16 %v452_v7, %v340_v6  ;;  %v299_v50 = vrot.slane %v262_v15, 4  ;;  %v354_v12 = vsel %vm239_vm0, %v3971_v20, %v353_v47  ;;  %v366_v24 = vsel %vm239_vm0, %v3974_v21, %v365_v48  ;;  %v4158_v6 = vld [vmem:[%s3930_s19 + $0x58] sm:$0xff] }
  0x26   : > { %v378_v9 = vsel %vm239_vm0, %v3982_v26, %v377_v2  ;;  %v390_v13 = vsel %vm239_vm0, %v3990_v31, %v389_v36  ;;  %3765 = vrot.lane.b32.xlu1 %v3764_v46, %s3856_s21  ;;  %v323_v51 = vrot.slane %v286_v8, 4  ;;  %v362_v52 = vperm.slane %v354_v12, %v3951_v11 }
  0x27   : > { %v300_v28 = vsel %vm239_vm0, %v299_v50, %v250_v4  ;;  %v374_v53 = vperm.slane %v366_v24, %v3951_v11  ;;  %v386_v21 = vperm.slane %v378_v9, %v3951_v11  ;;  %v398_v26 = vperm.slane %v390_v13, %v3951_v11  ;;  %v4179_v9 = vld [vmem:[%s3930_s19 + $0x88] sm:$0xff] }
  0x28   : > { %v4092_v20 = vperm.slane %v300_v28, %v3965_v18  ;;  %v301_v47 = vrot.slane %v250_v4, 4  ;;  %v324_v31 = vsel %vm239_vm0, %v323_v51, %v274_v17  ;;  %v325_v55 = vrot.slane %v274_v17, 4  ;;  %v4154_v4 = vld [vmem:[%s3930_s19 + $0x48] sm:$0xff]  ;;  %v4185_v28 = vld [vmem:[%s3930_s19 + $0xf8] sm:$0xff] }
  0x29   : > { %v411_v48 = vrot.slane %v374_v53, 4  ;;  %v413_v56 = vrot.slane %v362_v52, 4  ;;  %v4098_v57 = vperm.slane %v324_v31, %v3965_v18  ;;  %v435_v59 = vrot.slane %v398_v26, 4  ;;  %v4182_v13 = vld [vmem:[%s3930_s19 + $0xe8] sm:$0xff] }
  0x2a   : > { %v302_v60 = vsel %vm239_vm0, %v262_v15, %v301_v47  ;;  %v437_v61 = vrot.slane %v386_v21, 4  ;;  %v326_v1 = vsel %vm239_vm0, %v286_v8, %v325_v55  ;;  %v463_v38 = vrot.slane %v4108_v3, 4  ;;  %v4161_v15 = vld [vmem:[%s3930_s19 + $0xa8] sm:$0xff]  ;;  %v4203_v55 = vld [vmem:[%s3930_s19 + $0xd8] sm:$0xff] }
  0x2b   : > { %v412_v62 = vsel %vm239_vm0, %v411_v48, %v362_v52  ;;  %v4103_v0 = vperm.slane %v302_v60, %v3965_v18  ;;  %v414_v2 = vsel %vm239_vm0, %v374_v53, %v413_v56  ;;  %v343_v10 = vrot.slane %v4098_v57, 4  ;;  %v4191_v53 = vld [vmem:[%s3930_s19 + $0x98] sm:$0xff]  ;;  %v4200_v48 = vld [vmem:[%s3930_s19 + $0xc8] sm:$0xff] }
  0x2c   : > { %v4112_v14 = vperm.slane %v412_v62, %v3965_v18  ;;  %v436_v16 = vsel %vm239_vm0, %v435_v59, %v386_v21  ;;  %v4116_v19 = vperm.slane %v326_v1, %v3965_v18  ;;  %3760 = vrot.lane.b32.xlu0 %v3759_v49, %s3857_s22  ;;  %v4127_v27 = vperm.slane %v414_v2, %v3965_v18  ;;  %v4173_v49 = vld [vmem:[%s3930_s19 + $0xb8] sm:$0xff] }
  0x2d   : > { %v4123_v23 = vperm.slane %v436_v16, %v3965_v18  ;;  %v349_v25 = vrot.slane %v4103_v0, 4  ;;  %v438_v29 = vsel %vm239_vm0, %v398_v26, %v437_v61  ;;  %v344_v35 = vsel %vm239_vm0, %v343_v10, %v4092_v20 }
  0x2e   : > { %v4142_v36 = vperm.slane %v438_v29, %v3965_v18  ;;  %v465_v39 = vrot.slane %v4131_v30, 4  ;;  %v461_v43 = vrot.slane %v4127_v27, 4  ;;  %v475_v44 = vrot.slane %v4119_v22, 4 }
  0x2f   : > { %v455_v40 = vrot.slane %v4123_v23, 4  ;;  %v350_v42 = vsel %vm239_vm0, %v4116_v19, %v349_v25  ;;  %v464_v5 = vsel %vm239_vm0, %v463_v38, %v4131_v30  ;;  %v477_v41 = vrot.slane %v4145_v37, 4 }
  0x30   : > { %v487_v7 = vrot.slane %v4134_v33, 4  ;;  %v499_v17 = vrot.slane %v4137_v34, 4  ;;  %v462_v46 = vsel %vm239_vm0, %v4142_v36, %v461_v43  ;;  %v470_v8 = vperm.slane %v464_v5, %v3951_v11 }
  0x31   : > { %v456_v45 = vsel %vm239_vm0, %v455_v40, %v4112_v14  ;;  %v476_v50 = vsel %vm239_vm0, %v475_v44, %v4145_v37  ;;  %v3784_v24 = vpack.i.bf16 %v462_v46, %v350_v42  ;;  %v575_v47 = vrot.slane %v4161_v15, 4 }
  0x32   : > { %v3769_v12 = vpack.i.bf16 %v456_v45, %v344_v35  ;;  %v482_v51 = vperm.slane %v476_v50, %v3951_v11  ;;  %v488_v52 = vsel %vm239_vm0, %v487_v7, %v4154_v4  ;;  %v500_v26 = vsel %vm239_vm0, %v499_v17, %v4158_v6 }
  0x33   : > { %v494_v21 = vperm.slane %v488_v52, %v3951_v11  ;;  %v577_v31 = vrot.slane %v4179_v9, 4  ;;  %v506_v56 = vperm.slane %v500_v26, %v3951_v11  ;;  %v587_v60 = vrot.slane %v4173_v49, 4 }
  0x34   : > { %3770 = vrot.lane.b32.xlu1 %v3769_v12, %s3858_s23  ;;  %v511_v59 = vrot.slane %v482_v51, 4  ;;  %v589_v61 = vrot.slane %v4191_v53, 4  ;;  %3785 = vrot.lane.b32.xlu0 %v3784_v24, %s3859_s24  ;;  %v576_v62 = vsel %vm239_vm0, %v575_v47, %v4179_v9  ;;  %v599_v1 = vrot.slane %v4182_v13, 4 }
  0x35   : > { %v611_v2 = vrot.slane %v4185_v28, 4  ;;  %v513_v10 = vrot.slane %v470_v8, 4  ;;  %v535_v25 = vrot.slane %v506_v56, 4  ;;  %v582_v29 = vperm.slane %v576_v62, %v3951_v11 }
  0x36   : > { %v512_v16 = vsel %vm239_vm0, %v511_v59, %v470_v8  ;;  %v588_v35 = vsel %vm239_vm0, %v587_v60, %v4191_v53  ;;  %v600_v42 = vsel %vm239_vm0, %v599_v1, %v4200_v48  ;;  %v537_v50 = vrot.slane %v494_v21, 4 }
  0x37   : > { %v4218_v38 = vperm.slane %v512_v16, %v3965_v18  ;;  %v594_v40 = vperm.slane %v588_v35, %v3951_v11  ;;  %v612_v43 = vsel %vm239_vm0, %v611_v2, %v4203_v55  ;;  %v536_v44 = vsel %vm239_vm0, %v535_v25, %v494_v21 }
  0x38   : > { %v606_v5 = vperm.slane %v600_v42, %v3951_v11  ;;  %v618_v7 = vperm.slane %v612_v43, %v3951_v11  ;;  %v514_v17 = vsel %vm239_vm0, %v482_v51, %v513_v10  ;;  %v4230_v45 = vperm.slane %v536_v44, %v3965_v18 }
  0x39   : > { %v623_v46 = vrot.slane %v594_v40, 4  ;;  %v522_v8 = vperm.slane %v514_v17, %v3965_v18  ;;  %v625_v24 = vrot.slane %v582_v29, 4  ;;  %v345_v26 = vrot.slane %v4092_v20, 4 }
  0x3a   : > { %v647_v12 = vrot.slane %v618_v7, 4  ;;  %v649_v52 = vrot.slane %v606_v5, 4  ;;  %v559_v47 = vrot.slane %v4230_v45, 4  ;;  %v538_v60 = vsel %vm239_vm0, %v506_v56, %v537_v50 }
  0x3b   : > { %v624_v59 = vsel %vm239_vm0, %v623_v46, %v582_v29  ;;  %v565_v62 = vrot.slane %v522_v8, 4  ;;  %v546_v2 = vperm.slane %v538_v60, %v3965_v18  ;;  %v626_v21 = vsel %vm239_vm0, %v594_v40, %v625_v24 }
  0x3c   : > { %v4238_v51 = vperm.slane %v624_v59, %v3965_v18  ;;  %v648_v1 = vsel %vm239_vm0, %v647_v12, %v606_v5  ;;  %v560_v10 = vsel %vm239_vm0, %v559_v47, %v4218_v38  ;;  %v634_v16 = vperm.slane %v626_v21, %v3965_v18 }
  0x3d   : > { %v4246_v20 = vperm.slane %v648_v1, %v3965_v18  ;;  %v650_v56 = vsel %vm239_vm0, %v618_v7, %v649_v52  ;;  %v563_v25 = vrot.slane %v546_v2, 4  ;;  %v566_v35 = vsel %vm239_vm0, %v546_v2, %v565_v62 }
  0x3e   : > { %v658_v29 = vperm.slane %v650_v56, %v3965_v18  ;;  %v346_v42 = vsel %vm239_vm0, %v4098_v57, %v345_v26  ;;  %v677_v43 = vrot.slane %v634_v16, 4  ;;  %v457_v44 = vrot.slane %v4112_v14, 4 }
  0x3f   : > { %v671_v40 = vrot.slane %v4246_v20, 4  ;;  %v466_v5 = vsel %vm239_vm0, %v4108_v3, %v465_v39  ;;  %v564_v7 = vsel %vm239_vm0, %v563_v25, %v522_v8  ;;  %v478_v57 = vsel %vm239_vm0, %v4119_v22, %v477_v41 }
  0x40   : > { %v675_v17 = vrot.slane %v658_v29, 4  ;;  %v474_v46 = vperm.slane %v466_v5, %v3951_v11  ;;  %v678_v14 = vsel %vm239_vm0, %v658_v29, %v677_v43  ;;  %v458_v30 = vsel %vm239_vm0, %v4123_v23, %v457_v44 }
  0x41   : > { %v672_v50 = vsel %vm239_vm0, %v671_v40, %v4238_v51  ;;  %v486_v3 = vperm.slane %v478_v57, %v3951_v11  ;;  %v3804_v12 = vpack.i.bf16 %v678_v14, %v566_v35  ;;  %v3774_v24 = vpack.i.bf16 %v458_v30, %v346_v42 }
  0x42   : > { %v3789_v39 = vpack.i.bf16 %v672_v50, %v560_v10  ;;  %v676_v8 = vsel %vm239_vm0, %v675_v17, %v634_v16  ;;  %v489_v37 = vrot.slane %v4154_v4, 4  ;;  %v501_v22 = vrot.slane %v4158_v6, 4 }
  0x43   : > { %v3799_v52 = vpack.i.bf16 %v676_v8, %v564_v7  ;;  %v523_v41 = vrot.slane %v486_v3, 4  ;;  %3775 = vrot.lane.b32.xlu2 %v3774_v24, %s3861_s26  ;;  %v578_v23 = vsel %vm239_vm0, %v4161_v15, %v577_v31  ;;  %v590_v26 = vsel %vm239_vm0, %v4173_v49, %v589_v61 }
  0x44   : > { %3790 = vrot.lane.b32.xlu1 %v3789_v39, %s3860_s25  ;;  %v601_v4 = vrot.slane %v4200_v48, 4  ;;  %v613_v6 = vrot.slane %v4203_v55, 4  ;;  %v490_v47 = vsel %vm239_vm0, %v4134_v33, %v489_v37  ;;  %v502_v9 = vsel %vm239_vm0, %v4137_v34, %v501_v22 }
  0x45   : > { %3800 = vrot.lane.b32.xlu0 %v3799_v52, %s3862_s27  ;;  %v524_v15 = vsel %vm239_vm0, %v523_v41, %v474_v46  ;;  %v586_v53 = vperm.slane %v578_v23, %v3951_v11  ;;  %v498_v31 = vperm.slane %v490_v47, %v3951_v11  ;;  %v510_v49 = vperm.slane %v502_v9, %v3951_v11 }
  0x46   : > { %v4297_v48 = vperm.slane %v524_v15, %v3965_v18  ;;  %v598_v55 = vperm.slane %v590_v26, %v3951_v11  ;;  %v602_v61 = vsel %vm239_vm0, %v4182_v13, %v601_v4  ;;  %v614_v33 = vsel %vm239_vm0, %v4185_v28, %v613_v6 }
  0x47   : > { %v525_v34 = vrot.slane %v474_v46, 4  ;;  %v637_v59 = vrot.slane %v586_v53, 4  ;;  %v547_v60 = vrot.slane %v510_v49, 4  ;;  %v610_v1 = vperm.slane %v602_v61, %v3951_v11 }
  0x48   : > { %v569_v62 = vrot.slane %v4297_v48, 4  ;;  %v622_v2 = vperm.slane %v614_v33, %v3951_v11  ;;  %v635_v21 = vrot.slane %v598_v55, 4  ;;  %v549_v16 = vrot.slane %v498_v31, 4 }
  0x49   : > { %v526_v10 = vsel %vm239_vm0, %v486_v3, %v525_v34  ;;  %v638_v56 = vsel %vm239_vm0, %v598_v55, %v637_v59  ;;  %v548_v13 = vsel %vm239_vm0, %v547_v60, %v498_v31  ;;  %v661_v43 = vrot.slane %v610_v1, 4 }
  0x4a   : > { %v659_v25 = vrot.slane %v622_v2, 4  ;;  %v4311_v28 = vperm.slane %v526_v10, %v3965_v18  ;;  %v4314_v29 = vperm.slane %v638_v56, %v3965_v18  ;;  %v554_v35 = vperm.slane %v548_v13, %v3965_v18 }
  0x4b   : > { %v636_v42 = vsel %vm239_vm0, %v635_v21, %v586_v53  ;;  %v550_v40 = vsel %vm239_vm0, %v510_v49, %v549_v16  ;;  %v347_v17 = vrot.slane %v4116_v19, 4  ;;  %v662_v50 = vsel %vm239_vm0, %v622_v2, %v661_v43 }
  0x4c   : > { %3805 = vrot.lane.b32.xlu1 %v3804_v12, %s3863_s28  ;;  %v642_v44 = vperm.slane %v636_v42, %v3965_v18  ;;  %v660_v5 = vsel %vm239_vm0, %v659_v25, %v610_v1  ;;  %v558_v7 = vperm.slane %v550_v40, %v3965_v18  ;;  %v570_v46 = vsel %vm239_vm0, %v554_v35, %v569_v62 }
  0x4d   : > { %v666_v57 = vperm.slane %v660_v5, %v3965_v18  ;;  %v459_v14 = vrot.slane %v4142_v36, 4  ;;  %v670_v39 = vperm.slane %v662_v50, %v3965_v18  ;;  %v348_v8 = vsel %vm239_vm0, %v347_v17, %v4103_v0 }
  0x4e   : > { %v681_v30 = vrot.slane %v642_v44, 4  ;;  %v571_v3 = vrot.slane %v558_v7, 4  ;;  %v447_v12 = vrot.slane %v4047_v32, 4  ;;  %v561_v24 = vrot.slane %v4218_v38, 4 }
  0x4f   : > { %v460_v19 = vsel %vm239_vm0, %v459_v14, %v4127_v27  ;;  %v673_v52 = vrot.slane %v4238_v51, 4  ;;  %v683_v22 = vrot.slane %v670_v39, 4  ;;  %v3866_v26 = vmov 0.0  }
  0x50   : > { %v682_v37 = vsel %vm239_vm0, %v666_v57, %v681_v30  ;;  %v572_v36 = vsel %vm239_vm0, %v571_v3, %v4311_v28  ;;  %v3779_v41 = vpack.i.bf16 %v460_v19, %v348_v8  ;;  %v562_v32 = vsel %vm239_vm0, %v4230_v45, %v561_v24 }
  0x51   : > { %v3814_v23 = vpack.i.bf16 %v682_v37, %v570_v46  ;;  %v684_v0 = vsel %vm239_vm0, %v683_v22, %v4314_v29  ;;  %v674_v38 = vsel %vm239_vm0, %v4246_v20, %v673_v52  ;;  %v448_v51 = vsel %vm239_vm0, %v447_v12, %v4034_v63 }
  0x52   : > { %3780 = vrot.lane.b32.xlu2 %v3779_v41, %s3864_s29  ;;  %v3819_v27 = vpack.i.bf16 %v684_v0, %v572_v36  ;;  %v857_v4 = vperm.slane %v3866_v26, %v3951_v11  ;;  %v3794_v6 = vpack.i.bf16 %v674_v38, %v562_v32  ;;  %v567_v9 = vrot.slane %v554_v35, 4 }
  0x53   : > { %3815 = vrot.lane.b32.xlu0 %v3814_v23, %s3865_s30  ;;  %v679_v45 = vrot.slane %v666_v57, 4  ;;  %v573_v60 = vrot.slane %v4311_v28, 4  ;;  %v685_v62 = vrot.slane %v4314_v29, 4  ;;  %v335_v25 = vrot.slane %v4027_v58, 4 }
  0x54   : > { %3820 = vrot.lane.b32.xlu1 %v3819_v27, %s3867_s4  ;;  %v862_v47 = vrot.slane %v857_v4, 4  ;;  %v568_v63 = vsel %vm239_vm0, %v567_v9, %v4297_v48  ;;  %vm846_vm14 = vcmask 457728   ;;  %vm849_vm15 = vcmask 490496  }
  0x55   : > { %v680_v49 = vsel %vm239_vm0, %v679_v45, %v642_v44  ;;  %v574_v48 = vsel %vm239_vm0, %v558_v7, %v573_v60  ;;  %v686_v1 = vsel %vm239_vm0, %v670_v39, %v685_v62  ;;  %v336_v42 = vsel %vm239_vm0, %v335_v25, %v4020_v54 }
  0x56   : > { %v863_v15 = vsel %vm239_vm0, %v862_v47, %v857_v4  ;;  %v864_v53 = vsel %vm239_vm0, %v857_v4, %v862_v47  ;;  %v3809_v59 = vpack.i.bf16 %v680_v49, %v568_v63  ;;  %v3824_v2 = vpack.i.bf16 %v686_v1, %v574_v48 }
  0x57   : > { %v868_v31 = vperm.slane %v863_v15, %v3965_v18  ;;  %v872_v20 = vperm.slane %v864_v53, %v3965_v18 }
  0x59   : > { %v884_v55 = vrot.slane %v868_v31, 4  ;;  %v887_v61 = vrot.slane %v872_v20, 4 }
  0x5a   : > { %3795 = vrot.lane.b32.xlu2 %v3794_v6, %s3868_s5 }
  0x5b   : > { %v886_v33 = vsel %vm239_vm0, %v868_v31, %v884_v55  ;;  %v888_v34 = vsel %vm239_vm0, %v887_v61, %v872_v20  ;;  %v4371_v21 = vsel %vm239_vm0, %v884_v55, %v868_v31  ;;  %v889_v10 = vsel %vm239_vm0, %v872_v20, %v887_v61 }
  0x5c   : > { %897 = vrot.lane.b32.xlu0 %v886_v33, %s3855_s20  ;;  %901 = vrot.lane.b32.xlu1 %v888_v34, %s3857_s22  ;;  %s3871_s20 = smov 116   ;;  %s3873_s22 = smov 124  }
  0x62   : > { %3810 = vrot.lane.b32.xlu2 %v3809_v59, %s3869_s6 }
  0x64   : > { %913 = vrot.lane.b32.xlu1 %v886_v33, %s3861_s26  ;;  %909 = vrot.lane.b32.xlu0 %v4371_v21, %s3858_s23  ;;  %s3874_s23 = smov 104   ;;  %s3877_s26 = smov 92  }
  0x6a   : > { %3825 = vrot.lane.b32.xlu2 %v3824_v2, %s3870_s7 }
  0x6c   : > { %925 = vrot.lane.b32.xlu1 %v4371_v21, %s3860_s25  ;;  %921 = vrot.lane.b32.xlu0 %v889_v10, %s3859_s24  ;;  %s3875_s24 = smov 108   ;;  %s3876_s25 = smov 112  }
  0x72   : > { %905 = vrot.lane.b32.xlu2 %v889_v10, %s3856_s21  ;;  %s3872_s21 = smov 120  }
  0x74   : > { %934 = vrot.lane.b32.xlu1 %v889_v10, %s3863_s28  ;;  %931 = vrot.lane.b32.xlu0 %v888_v34, %s3862_s27  ;;  %s3878_s27 = smov 96   ;;  %s3879_s28 = smov 100  }
  0x7a   : > { %917 = vrot.lane.b32.xlu2 %v888_v34, %s3864_s29  ;;  %s3880_s29 = smov 80  }
  0x7c   : > { %943 = vrot.lane.b32.xlu1 %v888_v34, %s3867_s4  ;;  %940 = vrot.lane.b32.xlu0 %v886_v33, %s3865_s30  ;;  %s3881_s30 = smov 84   ;;  %s3882_s4 = smov 88  }
  0x82   : > { %928 = vrot.lane.b32.xlu2 %v886_v33, %s3868_s5  ;;  %s3883_s5 = smov 68  }
  0x8a   : > { %937 = vrot.lane.b32.xlu2 %v4371_v21, %s3869_s6  ;;  %s3884_s6 = smov 72  }
  0x92   : > { %946 = vrot.lane.b32.xlu2 %v889_v10, %s3870_s7  ;;  %s3885_s7 = smov 76  }
  0x96   : > { %v3756_v16 = vpop.permute.xlu0 %3755 }
  0x97   : > { %v3758_v29 = vunpack.i.h.bf16 %v3756_v16  ;;  %v3757_v35 = vunpack.i.l.bf16 %v3756_v16 }
  0x98   : > { %v3766_v56 = vpop.permute.xlu1 %3765 }
  0x99   : > { %v809_v44 = vsel %vm807_vm1, %v448_v51, %v3758_v29  ;;  %v808_v5 = vsel %vm807_vm1, %v336_v42, %v3757_v35  ;;  %v3768_v57 = vunpack.i.h.bf16 %v3766_v56  ;;  %v3767_v50 = vunpack.i.l.bf16 %v3766_v56 }
  0x9d   : > { %v3776_v13 = vpop.permute.xlu2 %3775 }
  0x9e   : > { %v3761_v28 = vpop.permute.xlu0 %3760  ;;  %v3778_v19 = vunpack.i.h.bf16 %v3776_v13  ;;  %v3777_v24 = vunpack.i.l.bf16 %v3776_v13 }
  0x9f   : > { %v3763_v40 = vunpack.i.h.bf16 %v3761_v28  ;;  %v3762_v43 = vunpack.i.l.bf16 %v3761_v28 }
  0xa1   : > { %v811_v58 = vsel %vm810_vm2, %v808_v5, %v3762_v43  ;;  %v812_v46 = vsel %vm810_vm2, %v809_v44, %v3763_v40 }
  0xa2   : > { %v814_v30 = vsel %vm813_vm3, %v811_v58, %v3767_v50  ;;  %v815_v3 = vsel %vm813_vm3, %v812_v46, %v3768_v57  ;;  %v234_v46 = vld [vmem:[%s5095_s1] sm:$0xff]  ;;  %v235_v50 = vld [vmem:[%s5095_s1 + $0x8] sm:$0xff] }
  0xa6   : > { %v3771_v7 = vpop.permute.xlu1 %3770  ;;  %v3786_v39 = vpop.permute.xlu0 %3785 }
  0xa7   : > { %v3773_v54 = vunpack.i.h.bf16 %v3771_v7  ;;  %v3772_v14 = vunpack.i.l.bf16 %v3771_v7  ;;  %v3788_v22 = vunpack.i.h.bf16 %v3786_v39  ;;  %v3787_v41 = vunpack.i.l.bf16 %v3786_v39 }
  0xa9   : > { %v817_v8 = vsel %vm816_vm4, %v814_v30, %v3772_v14  ;;  %v818_v12 = vsel %vm816_vm4, %v815_v3, %v3773_v54  ;;  %v236_v54 = vld [vmem:[%s5095_s1 + $0x10] sm:$0xff]  ;;  %v237_v14 = vld [vmem:[%s5095_s1 + $0x18] sm:$0xff] }
  0xaa   : > { %v820_v37 = vsel %vm819_vm5, %v817_v8, %v3777_v24  ;;  %v821_v36 = vsel %vm819_vm5, %v818_v12, %v3778_v19 }
  0xac   : > { %v3781_v17 = vpop.permute.xlu2 %3780 }
  0xad   : > { %v3783_v0 = vunpack.i.h.bf16 %v3781_v17  ;;  %v3782_v32 = vunpack.i.l.bf16 %v3781_v17 }
  0xaf   : > { %v823_v27 = vsel %vm822_vm6, %v820_v37, %v3782_v32  ;;  %v824_v38 = vsel %vm822_vm6, %v821_v36, %v3783_v0 }
  0xb0   : > { %v826_v4 = vsel %vm825_vm7, %v823_v27, %v3787_v41  ;;  %v827_v6 = vsel %vm825_vm7, %v824_v38, %v3788_v22 }
  0xb4   : > { %v3796_v52 = vpop.permute.xlu2 %3795 }
  0xb5   : > { %v3798_v9 = vunpack.i.h.bf16 %v3796_v52  ;;  %v3797_v45 = vunpack.i.l.bf16 %v3796_v52 }
  0xb6   : > { %v3791_v23 = vpop.permute.xlu1 %3790 }
  0xb7   : > { %v3793_v51 = vunpack.i.h.bf16 %v3791_v23  ;;  %v3792_v26 = vunpack.i.l.bf16 %v3791_v23  ;;  %v3801_v47 = vpop.permute.xlu0 %3800 }
  0xb8   : > { %v3803_v20 = vunpack.i.h.bf16 %v3801_v47  ;;  %v3802_v63 = vunpack.i.l.bf16 %v3801_v47 }
  0xb9   : > { %v829_v53 = vsel %vm828_vm8, %v826_v4, %v3792_v26  ;;  %v830_v31 = vsel %vm828_vm8, %v827_v6, %v3793_v51 }
  0xba   : > { %v832_v55 = vsel %vm831_vm9, %v829_v53, %v3797_v45  ;;  %v833_v61 = vsel %vm831_vm9, %v830_v31, %v3798_v9 }
  0xbb   : > { %v835_v59 = vsel %vm834_vm10, %v832_v55, %v3802_v63  ;;  %v836_v60 = vsel %vm834_vm10, %v833_v61, %v3803_v20 }
  0xbc   : > { %v3811_v15 = vpop.permute.xlu2 %3810 }
  0xbd   : > { %v3813_v62 = vunpack.i.h.bf16 %v3811_v15  ;;  %v3812_v48 = vunpack.i.l.bf16 %v3811_v15 }
  0xbe   : > { %v3806_v49 = vpop.permute.xlu1 %3805 }
  0xbf   : > { %v3808_v33 = vunpack.i.h.bf16 %v3806_v49  ;;  %v3807_v34 = vunpack.i.l.bf16 %v3806_v49 }
  0xc1   : > { %v838_v1 = vsel %vm837_vm11, %v835_v59, %v3807_v34  ;;  %v839_v2 = vsel %vm837_vm11, %v836_v60, %v3808_v33 }
  0xc2   : > { %v841_v25 = vsel %vm840_vm12, %v838_v1, %v3812_v48  ;;  %v842_v28 = vsel %vm840_vm12, %v839_v2, %v3813_v62 }
  0xc4   : > { %v3826_v10 = vpop.permute.xlu2 %3825 }
  0xc5   : > { %v3816_v16 = vpop.permute.xlu0 %3815  ;;  %v3828_v35 = vunpack.i.h.bf16 %v3826_v10  ;;  %v3827_v5 = vunpack.i.l.bf16 %v3826_v10 }
  0xc6   : > { %v3818_v56 = vunpack.i.h.bf16 %v3816_v16  ;;  %v3817_v13 = vunpack.i.l.bf16 %v3816_v16  ;;  %v3821_v29 = vpop.permute.xlu1 %3820 }
  0xc7   : > { %v3823_v42 = vunpack.i.h.bf16 %v3821_v29  ;;  %v3822_v40 = vunpack.i.l.bf16 %v3821_v29 }
  0xc8   : > { %v845_v43 = vsel %vm843_vm13, %v842_v28, %v3818_v56  ;;  %v844_v44 = vsel %vm843_vm13, %v841_v25, %v3817_v13 }
  0xc9   : > { %v848_v7 = vsel %vm846_vm14, %v845_v43, %v3823_v42  ;;  %v847_v17 = vsel %vm846_vm14, %v844_v44, %v3822_v40 }
  0xca   : > { %v851_v58 = vsel %vm849_vm15, %v848_v7, %v3828_v35  ;;  %v850_v57 = vsel %vm849_vm15, %v847_v17, %v3827_v5 }
  0xcb   : > { %990 = vmatpush.msra.mxu0 %v851_v58 }
  0xcc   : > { %v906_v39 = vpop.permute.xlu2 %905 }
  0xcd   : > { %991 = vmatpush.msra.mxu0 %v850_v57 }
  0xce   : > { %3657 = vmatmul.msk.f32.vlgmr.msra.gmra.mxu0 %vm816_vm4, %v234_v46  ;;  %v898_v30 = vpop.permute.xlu0 %897  ;;  %v902_v3 = vpop.permute.xlu1 %901 }
  0xcf   : > { %v949_v8 = vsel %vm807_vm1, %v4371_v21, %v898_v30 }
  0xd0   : > { %v950_v12 = vsel %vm810_vm2, %v949_v8, %v902_v3 }
  0xd1   : > { %v951_v24 = vsel %vm813_vm3, %v950_v12, %v906_v39 }
  0xd4   : > { %v918_v36 = vpop.permute.xlu2 %917 }
  0xd6   : > { %3658 = vmatmul.msk.f32.gmra.mxu0 %vm816_vm4, %v235_v50  ;;  %v910_v19 = vpop.permute.xlu0 %909  ;;  %v914_v52 = vpop.permute.xlu1 %913 }
  0xd7   : > { %v952_v37 = vsel %vm816_vm4, %v951_v24, %v910_v19 }
  0xd8   : > { %v953_v22 = vsel %vm819_vm5, %v952_v37, %v914_v52 }
  0xd9   : > { %v954_v23 = vsel %vm822_vm6, %v953_v22, %v918_v36 }
  0xdc   : > { %v929_v27 = vpop.permute.xlu2 %928 }
  0xde   : > { %3659 = vmatmul.msk.f32.gmra.mxu0 %vm816_vm4, %v236_v54  ;;  %v922_v41 = vpop.permute.xlu0 %921  ;;  %v926_v0 = vpop.permute.xlu1 %925 }
  0xdf   : > { %v955_v32 = vsel %vm825_vm7, %v954_v23, %v922_v41 }
  0xe0   : > { %v956_v21 = vsel %vm828_vm8, %v955_v32, %v926_v0 }
  0xe1   : > { %v957_v51 = vsel %vm831_vm9, %v956_v21, %v929_v27 }
  0xe4   : > { %v938_v6 = vpop.permute.xlu2 %937 }
  0xe6   : > { %3660 = vmatmul.msk.f32.gmra.mxu0 %vm816_vm4, %v237_v14  ;;  %v932_v38 = vpop.permute.xlu0 %931  ;;  %v935_v26 = vpop.permute.xlu1 %934 }
  0xe7   : > { %v958_v4 = vsel %vm834_vm10, %v957_v51, %v932_v38 }
  0xe8   : > { %v959_v47 = vsel %vm837_vm11, %v958_v4, %v935_v26 }
  0xe9   : > { %v960_v9 = vsel %vm840_vm12, %v959_v47, %v938_v6 }
  0xec   : > { %v947_v20 = vpop.permute.xlu2 %946 }
  0xee   : > { %v941_v45 = vpop.permute.xlu0 %940  ;;  %v944_v53 = vpop.permute.xlu1 %943 }
  0xef   : > { %v961_v15 = vsel %vm843_vm13, %v960_v9, %v941_v45 }
  0xf0   : > { %v962_v31 = vsel %vm846_vm14, %v961_v15, %v944_v53 }
  0xf1   : > { %v4454_v63 = vsel %vm849_vm15, %v962_v31, %v947_v20 }
 0x14b   : > { %v993_v49 = vpop.f32.mrf.mxu0 }
 0x14c   : > { %v4457_v55 = vadd.f32 %v993_v49, %v4454_v63 }
 0x14e   : > { %1033 = vrot.lane.b32.xlu2 %v4457_v55, %s3871_s20  ;;  %1021 = vrot.lane.b32.xlu1 %v4457_v55, %s3872_s21 }
 0x14f   : > { %1009 = vrot.lane.b32.xlu0 %v4457_v55, %s3873_s22 }
 0x153   : > { %v996_v61 = vpop.f32.mrf.mxu0 }
 0x154   : > { %v4490_v33 = vadd.f32 %v996_v61, %v4454_v63 }
 0x156   : > { %1069 = vrot.lane.b32.xlu2 %v4457_v55, %s3874_s23  ;;  %1057 = vrot.lane.b32.xlu1 %v4457_v55, %s3875_s24 }
 0x157   : > { %1045 = vrot.lane.b32.xlu0 %v4457_v55, %s3876_s25 }
 0x15b   : > { %v999_v34 = vpop.f32.mrf.mxu0 }
 0x15c   : > { %v4523_v59 = vadd.f32 %v999_v34, %v4454_v63 }
 0x15e   : > { %1105 = vrot.lane.b32.xlu2 %v4457_v55, %s3877_s26  ;;  %1093 = vrot.lane.b32.xlu1 %v4457_v55, %s3878_s27 }
 0x15f   : > { %1081 = vrot.lane.b32.xlu0 %v4457_v55, %s3879_s28 }
 0x163   : > { %v1002_v2 = vpop.f32.mrf.mxu0 }
 0x164   : > { %v1003_v16 = vadd.f32 %v1002_v2, %v4454_v63 }
 0x166   : > { %1141 = vrot.lane.b32.xlu2 %v4457_v55, %s3880_s29  ;;  %1129 = vrot.lane.b32.xlu1 %v4457_v55, %s3881_s30 }
 0x167   : > { %1117 = vrot.lane.b32.xlu0 %v4457_v55, %s3882_s4 }
 0x16e   : > { %1177 = vrot.lane.b32.xlu2 %v4457_v55, %s3883_s5  ;;  %1165 = vrot.lane.b32.xlu1 %v4457_v55, %s3884_s6 }
 0x16f   : > { %1153 = vrot.lane.b32.xlu0 %v4457_v55, %s3885_s7 }
 0x176   : > { %1023 = vrot.lane.b32.xlu2 %v4490_v33, %s3872_s21  ;;  %1011 = vrot.lane.b32.xlu1 %v4490_v33, %s3873_s22 }
 0x177   : > { %1035 = vrot.lane.b32.xlu0 %v4490_v33, %s3871_s20 }
 0x17e   : > { %1059 = vrot.lane.b32.xlu2 %v4490_v33, %s3875_s24  ;;  %1047 = vrot.lane.b32.xlu1 %v4490_v33, %s3876_s25 }
 0x17f   : > { %1071 = vrot.lane.b32.xlu0 %v4490_v33, %s3874_s23 }
 0x186   : > { %1095 = vrot.lane.b32.xlu2 %v4490_v33, %s3878_s27  ;;  %1083 = vrot.lane.b32.xlu1 %v4490_v33, %s3879_s28 }
 0x187   : > { %1107 = vrot.lane.b32.xlu0 %v4490_v33, %s3877_s26 }
 0x18e   : > { %1131 = vrot.lane.b32.xlu2 %v4490_v33, %s3881_s30  ;;  %1119 = vrot.lane.b32.xlu1 %v4490_v33, %s3882_s4 }
 0x18f   : > { %1143 = vrot.lane.b32.xlu0 %v4490_v33, %s3880_s29 }
 0x196   : > { %1167 = vrot.lane.b32.xlu2 %v4490_v33, %s3884_s6  ;;  %1155 = vrot.lane.b32.xlu1 %v4490_v33, %s3885_s7 }
 0x197   : > { %1179 = vrot.lane.b32.xlu0 %v4490_v33, %s3883_s5 }
 0x19e   : > { %1013 = vrot.lane.b32.xlu2 %v4523_v59, %s3873_s22  ;;  %1037 = vrot.lane.b32.xlu1 %v4523_v59, %s3871_s20 }
 0x19f   : > { %1025 = vrot.lane.b32.xlu0 %v4523_v59, %s3872_s21 }
 0x1a6   : > { %1049 = vrot.lane.b32.xlu2 %v4523_v59, %s3876_s25  ;;  %1073 = vrot.lane.b32.xlu1 %v4523_v59, %s3874_s23 }
 0x1a7   : > { %1061 = vrot.lane.b32.xlu0 %v4523_v59, %s3875_s24 }
 0x1a8   : > { %v4537_v60 = vpop.permute.xlu2 %1033 }
 0x1ae   : > { %1085 = vrot.lane.b32.xlu2 %v4523_v59, %s3879_s28  ;;  %1109 = vrot.lane.b32.xlu1 %v4523_v59, %s3877_s26 }
 0x1af   : > { %1097 = vrot.lane.b32.xlu0 %v4523_v59, %s3878_s27 }
 0x1b0   : > { %v4545_v62 = vpop.permute.xlu2 %1069 }
 0x1b6   : > { %1121 = vrot.lane.b32.xlu2 %v4523_v59, %s3882_s4  ;;  %1145 = vrot.lane.b32.xlu1 %v4523_v59, %s3880_s29 }
 0x1b7   : > { %1133 = vrot.lane.b32.xlu0 %v4523_v59, %s3881_s30 }
 0x1b8   : > { %v4553_v48 = vpop.permute.xlu2 %1105 }
 0x1be   : > { %1157 = vrot.lane.b32.xlu2 %v4523_v59, %s3885_s7  ;;  %1181 = vrot.lane.b32.xlu1 %v4523_v59, %s3883_s5 }
 0x1bf   : > { %1169 = vrot.lane.b32.xlu0 %v4523_v59, %s3884_s6 }
 0x1c0   : > { %v1022_v1 = vpop.permute.xlu1 %1021  ;;  %v4565_v56 = vpop.permute.xlu2 %1141 }
 0x1c1   : > { %v1010_v10 = vpop.permute.xlu0 %1009 }
 0x1c6   : > { %1039 = vrot.lane.b32.xlu2 %v1003_v16, %s3871_s20  ;;  %1027 = vrot.lane.b32.xlu1 %v1003_v16, %s3872_s21  ;;  %s3684_s20 = sshll.u32 %s5103_s12, 10 }
 0x1c7   : > { %1015 = vrot.lane.b32.xlu0 %v1003_v16, %s3873_s22 }
 0x1c8   : > { %v4567_v13 = vpop.permute.xlu1 %1057  ;;  %v4578_v35 = vpop.permute.xlu2 %1177 }
 0x1c9   : > { %v4569_v25 = vpop.permute.xlu0 %1045 }
 0x1ce   : > { %1075 = vrot.lane.b32.xlu2 %v1003_v16, %s3874_s23  ;;  %1063 = vrot.lane.b32.xlu1 %v1003_v16, %s3875_s24  ;;  %s4827_s23 = scalar_lea.vmem %s5097_s3, %s3684_s20 }
 0x1cf   : > { %1051 = vrot.lane.b32.xlu0 %v1003_v16, %s3876_s25 }
 0x1d0   : > { %v4574_v28 = vpop.permute.xlu1 %1093  ;;  %v1024_v43 = vpop.permute.xlu2 %1023 }
 0x1d1   : > { %v4576_v29 = vpop.permute.xlu0 %1081 }
 0x1d6   : > { %1111 = vrot.lane.b32.xlu2 %v1003_v16, %s3877_s26  ;;  %1099 = vrot.lane.b32.xlu1 %v1003_v16, %s3878_s27 }
 0x1d7   : > { %1087 = vrot.lane.b32.xlu0 %v1003_v16, %s3879_s28 }
 0x1d8   : > { %v4583_v42 = vpop.permute.xlu1 %1129  ;;  %v1060_v7 = vpop.permute.xlu2 %1059 }
 0x1d9   : > { %v4585_v40 = vpop.permute.xlu0 %1117 }
 0x1de   : > { %1147 = vrot.lane.b32.xlu2 %v1003_v16, %s3880_s29  ;;  %1135 = vrot.lane.b32.xlu1 %v1003_v16, %s3881_s30 }
 0x1df   : > { %1123 = vrot.lane.b32.xlu0 %v1003_v16, %s3882_s4 }
 0x1e0   : > { %v4590_v44 = vpop.permute.xlu1 %1165  ;;  %v4597_v46 = vpop.permute.xlu2 %1095 }
 0x1e1   : > { %v4592_v5 = vpop.permute.xlu0 %1153 }
 0x1e6   : > { %1183 = vrot.lane.b32.xlu2 %v1003_v16, %s3883_s5  ;;  %1171 = vrot.lane.b32.xlu1 %v1003_v16, %s3884_s6 }
 0x1e7   : > { %1159 = vrot.lane.b32.xlu0 %v1003_v16, %s3885_s7 }
 0x1e8   : > { %v1012_v17 = vpop.permute.xlu1 %1011  ;;  %v4599_v30 = vpop.permute.xlu2 %1131 }
 0x1e9   : > { %v1036_v58 = vpop.permute.xlu0 %1035 }
 0x1f0   : > { %v1048_v57 = vpop.permute.xlu1 %1047  ;;  %v4605_v8 = vpop.permute.xlu2 %1167 }
 0x1f1   : > { %v1072_v50 = vpop.permute.xlu0 %1071 }
 0x1f8   : > { %v1084_v54 = vpop.permute.xlu1 %1083  ;;  %v1014_v24 = vpop.permute.xlu2 %1013 }
 0x1f9   : > { %v1108_v14 = vpop.permute.xlu0 %1107 }
 0x200   : > { %v4601_v3 = vpop.permute.xlu1 %1119  ;;  %v1050_v36 = vpop.permute.xlu2 %1049 }
 0x201   : > { %v4603_v39 = vpop.permute.xlu0 %1143 }
 0x208   : > { %v4607_v12 = vpop.permute.xlu1 %1155  ;;  %v1086_v32 = vpop.permute.xlu2 %1085 }
 0x209   : > { %1193 = vxpose.xlu0.b32.start [1/4] (short) (narrow) %v4457_v55, 8  ;;  %v4610_v19 = vpop.permute.xlu0 %1179 }
 0x20c   : > { %1257 = vxpose.xlu2.b32.start [1/4] (short) (narrow) %v1022_v1, 8 }
 0x210   : > { %v1038_v52 = vpop.permute.xlu1 %1037  ;;  %v1122_v38 = vpop.permute.xlu2 %1121 }
 0x211   : > { %1194 = vxpose.xlu0.b32.cont [2/4] (short) (narrow) %v4490_v33, 8  ;;  %v1026_v37 = vpop.permute.xlu0 %1025 }
 0x214   : > { %1258 = vxpose.xlu2.b32.cont [2/4] (short) (narrow) %v1024_v43, 8 }
 0x218   : > { %v1074_v22 = vpop.permute.xlu1 %1073  ;;  %v1158_v4 = vpop.permute.xlu2 %1157 }
 0x219   : > { %1195 = vxpose.xlu0.b32.cont [3/4] (short) (narrow) %v4523_v59, 8  ;;  %v1062_v41 = vpop.permute.xlu0 %1061 }
 0x21b   : > { %1225 = vxpose.xlu1.b32.start [1/4] (short) (narrow) %v1010_v10, 8 }
 0x21c   : > { %1259 = vxpose.xlu2.b32.cont [3/4] (short) (narrow) %v1026_v37, 8 }
 0x220   : > { %v1110_v23 = vpop.permute.xlu1 %1109  ;;  %v1040_v9 = vpop.permute.xlu2 %1039 }
 0x221   : > { %1196 = vxpose.xlu0.b32.end [4/4] (short) (narrow) %v1003_v16, 8  ;;  %v1098_v0 = vpop.permute.xlu0 %1097 }
 0x223   : > { %1226 = vxpose.xlu1.b32.cont [2/4] (short) (narrow) %v1012_v17, 8 }
 0x228   : > { %v1146_v27 = vpop.permute.xlu1 %1145  ;;  %v1076_v53 = vpop.permute.xlu2 %1075 }
 0x229   : > { %1289 = vxpose.xlu0.b32.start [1/4] (short) (narrow) %v4537_v60, 8  ;;  %v1134_v21 = vpop.permute.xlu0 %1133 }
 0x22b   : > { %1227 = vxpose.xlu1.b32.cont [3/4] (short) (narrow) %v1014_v24, 8 }
 0x230   : > { %v4615_v51 = vpop.permute.xlu1 %1181  ;;  %v1112_v63 = vpop.permute.xlu2 %1111 }
 0x231   : > { %1290 = vxpose.xlu0.b32.cont [2/4] (short) (narrow) %v1036_v58, 8  ;;  %v1170_v26 = vpop.permute.xlu0 %1169 }
 0x238   : > { %v1028_v6 = vpop.permute.xlu1 %1027  ;;  %v1148_v61 = vpop.permute.xlu2 %1147 }
 0x239   : > { %1291 = vxpose.xlu0.b32.cont [3/4] (short) (narrow) %v1038_v52, 8  ;;  %v1016_v47 = vpop.permute.xlu0 %1015  ;;  %1260 = vxpose.xlu2.b32.end [4/4] (short) (narrow) %v1028_v6, 8 }
 0x23a   : > { %1228 = vxpose.xlu1.b32.end [4/4] (short) (narrow) %v1016_v47, 8 }
 0x240   : > { %v1064_v15 = vpop.permute.xlu1 %1063  ;;  %v1184_v59 = vpop.permute.xlu2 %1183 }
 0x241   : > { %1292 = vxpose.xlu0.b32.end [4/4] (short) (narrow) %v1040_v9, 8  ;;  %1321 = vxpose.xlu2.b32.start [1/4] (short) (narrow) %v4569_v25, 8  ;;  %v1052_v45 = vpop.permute.xlu0 %1051 }
 0x242   : > { %1353 = vxpose.xlu1.b32.start [1/4] (short) (narrow) %v4567_v13, 8 }
 0x248   : > { %v1100_v20 = vpop.permute.xlu1 %1099 }
 0x249   : > { %1385 = vxpose.xlu0.b32.start [1/4] (short) (narrow) %v4545_v62, 8  ;;  %1322 = vxpose.xlu2.b32.cont [2/4] (short) (narrow) %v1048_v57, 8  ;;  %v1088_v31 = vpop.permute.xlu0 %1087 }
 0x24a   : > { %1354 = vxpose.xlu1.b32.cont [2/4] (short) (narrow) %v1060_v7, 8 }
 0x250   : > { %v1136_v55 = vpop.permute.xlu1 %1135 }
 0x251   : > { %1386 = vxpose.xlu0.b32.cont [2/4] (short) (narrow) %v1072_v50, 8  ;;  %1323 = vxpose.xlu2.b32.cont [3/4] (short) (narrow) %v1050_v36, 8  ;;  %v1124_v49 = vpop.permute.xlu0 %1123 }
 0x252   : > { %1355 = vxpose.xlu1.b32.cont [3/4] (short) (narrow) %v1062_v41, 8 }
 0x258   : > { %v1172_v34 = vpop.permute.xlu1 %1171 }
 0x259   : > { %1387 = vxpose.xlu0.b32.cont [3/4] (short) (narrow) %v1074_v22, 8  ;;  %1324 = vxpose.xlu2.b32.end [4/4] (short) (narrow) %v1052_v45, 8  ;;  %v1160_v33 = vpop.permute.xlu0 %1159 }
 0x25a   : > { %1356 = vxpose.xlu1.b32.end [4/4] (short) (narrow) %v1064_v15, 8 }
 0x261   : > { %1388 = vxpose.xlu0.b32.end [4/4] (short) (narrow) %v1076_v53, 8  ;;  %1417 = vxpose.xlu2.b32.start [1/4] (short) (narrow) %v4576_v29, 8 }
 0x262   : > { %1449 = vxpose.xlu1.b32.start [1/4] (short) (narrow) %v4574_v28, 8 }
 0x269   : > { %1481 = vxpose.xlu0.b32.start [1/4] (short) (narrow) %v4553_v48, 8  ;;  %1418 = vxpose.xlu2.b32.cont [2/4] (short) (narrow) %v1084_v54, 8 }
 0x26a   : > { %1450 = vxpose.xlu1.b32.cont [2/4] (short) (narrow) %v4597_v46, 8 }
 0x271   : > { %1482 = vxpose.xlu0.b32.cont [2/4] (short) (narrow) %v1108_v14, 8  ;;  %1419 = vxpose.xlu2.b32.cont [3/4] (short) (narrow) %v1086_v32, 8 }
 0x272   : > { %1451 = vxpose.xlu1.b32.cont [3/4] (short) (narrow) %v1098_v0, 8 }
 0x279   : > { %1483 = vxpose.xlu0.b32.cont [3/4] (short) (narrow) %v1110_v23, 8  ;;  %1420 = vxpose.xlu2.b32.end [4/4] (short) (narrow) %v1088_v31, 8 }
 0x27a   : > { %1452 = vxpose.xlu1.b32.end [4/4] (short) (narrow) %v1100_v20, 8 }
 0x281   : > { %1484 = vxpose.xlu0.b32.end [4/4] (short) (narrow) %v1112_v63, 8  ;;  %1513 = vxpose.xlu2.b32.start [1/4] (short) (narrow) %v4585_v40, 8 }
 0x282   : > { %1545 = vxpose.xlu1.b32.start [1/4] (short) (narrow) %v4583_v42, 8 }
 0x289   : > { %1577 = vxpose.xlu0.b32.start [1/4] (short) (narrow) %v4565_v56, 8  ;;  %1514 = vxpose.xlu2.b32.cont [2/4] (short) (narrow) %v4601_v3, 8 }
 0x28a   : > { %1546 = vxpose.xlu1.b32.cont [2/4] (short) (narrow) %v4599_v30, 8 }
 0x291   : > { %1578 = vxpose.xlu0.b32.cont [2/4] (short) (narrow) %v4603_v39, 8  ;;  %1515 = vxpose.xlu2.b32.cont [3/4] (short) (narrow) %v1122_v38, 8 }
 0x292   : > { %1547 = vxpose.xlu1.b32.cont [3/4] (short) (narrow) %v1134_v21, 8 }
 0x299   : > { %1579 = vxpose.xlu0.b32.cont [3/4] (short) (narrow) %v1146_v27, 8  ;;  %1516 = vxpose.xlu2.b32.end [4/4] (short) (narrow) %v1124_v49, 8 }
 0x29a   : > { %1548 = vxpose.xlu1.b32.end [4/4] (short) (narrow) %v1136_v55, 8 }
 0x2a1   : > { %1580 = vxpose.xlu0.b32.end [4/4] (short) (narrow) %v1148_v61, 8  ;;  %1609 = vxpose.xlu2.b32.start [1/4] (short) (narrow) %v4592_v5, 8 }
 0x2a2   : > { %1641 = vxpose.xlu1.b32.start [1/4] (short) (narrow) %v4590_v44, 8 }
 0x2a9   : > { %1673 = vxpose.xlu0.b32.start [1/4] (short) (narrow) %v4578_v35, 8  ;;  %1610 = vxpose.xlu2.b32.cont [2/4] (short) (narrow) %v4607_v12, 8 }
 0x2aa   : > { %1642 = vxpose.xlu1.b32.cont [2/4] (short) (narrow) %v4605_v8, 8 }
 0x2ad   : > { %v1209_v60 = vpop.trf.xlu0 }
 0x2b1   : > { %1674 = vxpose.xlu0.b32.cont [2/4] (short) (narrow) %v4610_v19, 8  ;;  %1611 = vxpose.xlu2.b32.cont [3/4] (short) (narrow) %v1158_v4, 8 }
 0x2b2   : > { %1643 = vxpose.xlu1.b32.cont [3/4] (short) (narrow) %v1170_v26, 8 }
 0x2b9   : > { %1675 = vxpose.xlu0.b32.cont [3/4] (short) (narrow) %v4615_v51, 8  ;;  %1612 = vxpose.xlu2.b32.end [4/4] (short) (narrow) %v1160_v33, 8 }
 0x2ba   : > { %1644 = vxpose.xlu1.b32.end [4/4] (short) (narrow) %v1172_v34, 8  ;;  %v1273_v48 = vpop.trf.xlu2 }
 0x2bb   : > { %v1705_v1 = vrot.slane %v1273_v48, 4 }
 0x2bd   : > { %v1706_v10 = vsel %vm239_vm0, %v1705_v1, %v1209_v60 }
 0x2be   : > { %v1710_v25 = vperm.slane %v1706_v10, %v3951_v11 }
 0x2c0   : > { %v1731_v42 = vrot.slane %v1710_v25, 4 }
 0x2c1   : > { %1676 = vxpose.xlu0.b32.end [4/4] (short) (narrow) %v1184_v59, 8 }
 0x2c6   : > { %v1241_v16 = vpop.trf.xlu1 }
 0x2cd   : > { %v1305_v62 = vpop.trf.xlu0 }
 0x2ce   : > { %v1711_v2 = vrot.slane %v1305_v62, 4 }
 0x2d0   : > { %v1712_v13 = vsel %vm239_vm0, %v1711_v2, %v1241_v16 }
 0x2d1   : > { %v1716_v35 = vperm.slane %v1712_v13, %v3951_v11 }
 0x2d3   : > { %v1729_v43 = vrot.slane %v1716_v35, 4  ;;  %v1732_v5 = vsel %vm239_vm0, %v1716_v35, %v1731_v42 }
 0x2d4   : > { %v1740_v57 = vperm.slane %v1732_v5, %v3965_v18 }
 0x2d5   : > { %v1730_v58 = vsel %vm239_vm0, %v1729_v43, %v1710_v25 }
 0x2d6   : > { %v1736_v14 = vperm.slane %v1730_v58, %v3965_v18  ;;  %v1759_v3 = vrot.slane %v1740_v57, 4 }
 0x2d8   : > { %v1755_v12 = vrot.slane %v1736_v14, 4 }
 0x2da   : > { %v1337_v28 = vpop.trf.xlu2 }
 0x2e6   : > { %v1369_v17 = vpop.trf.xlu1 }
 0x2ed   : > { %v1401_v56 = vpop.trf.xlu0 }
 0x2ee   : > { %v1717_v29 = vrot.slane %v1401_v56, 4 }
 0x2f0   : > { %v1718_v40 = vsel %vm239_vm0, %v1717_v29, %v1337_v28 }
 0x2f1   : > { %v1722_v44 = vperm.slane %v1718_v40, %v3951_v11 }
 0x2f3   : > { %v1743_v50 = vrot.slane %v1722_v44, 4 }
 0x2fa   : > { %v1433_v7 = vpop.trf.xlu2 }
 0x2fb   : > { %v1723_v46 = vrot.slane %v1433_v7, 4  ;;  %v1192_v7 = vld [vmem:[%s5096_s2 + $0x18] sm:$0xff] }
 0x2fc   : > { %3661 = vmatpush.xpose.msk.msrb.mxu0 %vm816_vm4, %v1192_v7  ;;  %3685 = vmatpush.xpose.msk.msra.mxu1 %vm816_vm4, %v1192_v7 }
 0x2fd   : > { %v1724_v54 = vsel %vm239_vm0, %v1723_v46, %v1369_v17  ;;  %3686 = vmatpush.xpose.msk.msra.mxu2 %vm816_vm4, %v1192_v7  ;;  %3687 = vmatpush.xpose.msk.msra.mxu3 %vm816_vm4, %v1192_v7  ;;  %v1191_v17 = vld [vmem:[%s5096_s2 + $0x10] sm:$0xff] }
 0x2fe   : > { %v1728_v30 = vperm.slane %v1724_v54, %v3951_v11  ;;  %v1190_v54 = vld [vmem:[%s5096_s2 + $0x8] sm:$0xff] }
 0x300   : > { %v1741_v39 = vrot.slane %v1728_v30, 4  ;;  %v1744_v8 = vsel %vm239_vm0, %v1728_v30, %v1743_v50  ;;  %3662 = vmatpush.xpose.msk.msrb.mxu0 %vm816_vm4, %v1191_v17  ;;  %3688 = vmatpush.xpose.msk.msra.mxu1 %vm816_vm4, %v1191_v17  ;;  %v1189_v30 = vld [vmem:[%s5096_s2] sm:$0xff] }
 0x301   : > { %v1752_v19 = vperm.slane %v1744_v8, %v3965_v18  ;;  %3689 = vmatpush.xpose.msk.msra.mxu2 %vm816_vm4, %v1191_v17  ;;  %3690 = vmatpush.xpose.msk.msra.mxu3 %vm816_vm4, %v1191_v17 }
 0x302   : > { %v1742_v24 = vsel %vm239_vm0, %v1741_v39, %v1722_v44 }
 0x303   : > { %v1748_v52 = vperm.slane %v1742_v24, %v3965_v18  ;;  %v1760_v37 = vsel %vm239_vm0, %v1752_v19, %v1759_v3  ;;  %v1757_v23 = vrot.slane %v1752_v19, 4 }
 0x304   : > { %1913 = vxpose.xlu0.b32.start [1/2] (short) (narrow) %v1760_v37, 32  ;;  %3663 = vmatpush.xpose.msk.msrb.mxu0 %vm816_vm4, %v1190_v54 }
 0x305   : > { %v1753_v36 = vrot.slane %v1748_v52, 4  ;;  %v1756_v22 = vsel %vm239_vm0, %v1748_v52, %v1755_v12  ;;  %v1758_v0 = vsel %vm239_vm0, %v1757_v23, %v1740_v57  ;;  %3691 = vmatpush.xpose.msk.msra.mxu1 %vm816_vm4, %v1190_v54  ;;  %3692 = vmatpush.xpose.msk.msra.mxu2 %vm816_vm4, %v1190_v54 }
 0x306   : > { %1849 = vxpose.xlu1.b32.start [1/2] (short) (narrow) %v1756_v22, 32  ;;  %v1465_v32 = vpop.trf.xlu1  ;;  %3693 = vmatpush.xpose.msk.msra.mxu3 %vm816_vm4, %v1190_v54 }
 0x307   : > { %v1754_v41 = vsel %vm239_vm0, %v1753_v36, %v1736_v14 }
 0x308   : > { %1817 = vxpose.xlu2.b32.start [1/2] (short) (narrow) %v1754_v41, 32  ;;  %3664 = vmatpush.xpose.msk.msrb.mxu0 %vm816_vm4, %v1189_v30 }
 0x309   : > { %3694 = vmatpush.xpose.msk.msra.mxu1 %vm816_vm4, %v1189_v30  ;;  %3695 = vmatpush.xpose.msk.msra.mxu2 %vm816_vm4, %v1189_v30 }
 0x30a   : > { %3696 = vmatpush.xpose.msk.msra.mxu3 %vm816_vm4, %v1189_v30 }
 0x30d   : > { %v1497_v27 = vpop.trf.xlu0 }
 0x31a   : > { %v1529_v21 = vpop.trf.xlu2 }
 0x31b   : > { %v1761_v51 = vrot.slane %v1529_v21, 4 }
 0x31d   : > { %v1762_v4 = vsel %vm239_vm0, %v1761_v51, %v1465_v32 }
 0x31e   : > { %v1766_v9 = vperm.slane %v1762_v4, %v3951_v11 }
 0x320   : > { %v1787_v31 = vrot.slane %v1766_v9, 4 }
 0x326   : > { %v1561_v38 = vpop.trf.xlu1 }
 0x327   : > { %v1767_v26 = vrot.slane %v1561_v38, 4 }
 0x329   : > { %v1768_v47 = vsel %vm239_vm0, %v1767_v26, %v1497_v27 }
 0x32a   : > { %v1772_v15 = vperm.slane %v1768_v47, %v3951_v11 }
 0x32c   : > { %v1785_v63 = vrot.slane %v1772_v15, 4  ;;  %v1788_v49 = vsel %vm239_vm0, %v1772_v15, %v1787_v31 }
 0x32d   : > { %v1593_v6 = vpop.trf.xlu0  ;;  %v1796_v62 = vperm.slane %v1788_v49, %v3965_v18 }
 0x32e   : > { %v1786_v59 = vsel %vm239_vm0, %v1785_v63, %v1766_v9 }
 0x32f   : > { %v1792_v2 = vperm.slane %v1786_v59, %v3965_v18  ;;  %v1815_v13 = vrot.slane %v1796_v62, 4 }
 0x331   : > { %v1811_v35 = vrot.slane %v1792_v2, 4 }
 0x33a   : > { %v1625_v33 = vpop.trf.xlu2 }
 0x346   : > { %v1657_v45 = vpop.trf.xlu1 }
 0x347   : > { %v1773_v53 = vrot.slane %v1657_v45, 4 }
 0x349   : > { %v1774_v20 = vsel %vm239_vm0, %v1773_v53, %v1593_v6 }
 0x34a   : > { %v1778_v55 = vperm.slane %v1774_v20, %v3951_v11 }
 0x34c   : > { %v1799_v48 = vrot.slane %v1778_v55, 4 }
 0x34d   : > { %v1689_v61 = vpop.trf.xlu0 }
 0x34e   : > { %v1779_v34 = vrot.slane %v1689_v61, 4 }
 0x350   : > { %v1780_v60 = vsel %vm239_vm0, %v1779_v34, %v1625_v33 }
 0x351   : > { %v1784_v1 = vperm.slane %v1780_v60, %v3951_v11 }
 0x353   : > { %v1797_v10 = vrot.slane %v1784_v1, 4  ;;  %v1800_v16 = vsel %vm239_vm0, %v1784_v1, %v1799_v48 }
 0x354   : > { %v1808_v56 = vperm.slane %v1800_v16, %v3965_v18 }
 0x355   : > { %v1798_v25 = vsel %vm239_vm0, %v1797_v10, %v1778_v55 }
 0x356   : > { %v1816_v28 = vsel %vm239_vm0, %v1808_v56, %v1815_v13  ;;  %v1804_v29 = vperm.slane %v1798_v25, %v3965_v18  ;;  %v1813_v44 = vrot.slane %v1808_v56, 4 }
 0x357   : > { %1914 = vxpose.xlu0.b32.end [2/2] (short) (narrow) %v1816_v28, 32 }
 0x358   : > { %v1812_v42 = vsel %vm239_vm0, %v1804_v29, %v1811_v35  ;;  %v1809_v40 = vrot.slane %v1804_v29, 4  ;;  %v1814_v5 = vsel %vm239_vm0, %v1813_v44, %v1796_v62 }
 0x359   : > { %1850 = vxpose.xlu1.b32.end [2/2] (short) (narrow) %v1812_v42, 32 }
 0x35a   : > { %v1810_v43 = vsel %vm239_vm0, %v1809_v40, %v1792_v2 }
 0x35b   : > { %1818 = vxpose.xlu2.b32.end [2/2] (short) (narrow) %v1810_v43, 32 }
 0x373   : > { %1881 = vxpose.xlu2.b32.start [1/2] (short) (narrow) %v1758_v0, 32 }
 0x37b   : > { %1882 = vxpose.xlu2.b32.end [2/2] (short) (narrow) %v1814_v5, 32 }
 0x3ec   : > { %v1833_v58 = vpop.trf.xlu2 }
 0x3ed   : > { %v1947_v41 = vrot.slane %v1833_v58, 4 }
 0x3f3   : > { %v1929_v50 = vpop.trf.xlu0 }
 0x3f4   : > { %v4691_v46 = vpop.trf.xlu2  ;;  %v1957_v12 = vrot.slane %v1929_v50, 4 }
 0x3f5   : > { %v1865_v57 = vpop.trf.xlu1  ;;  %v2003_v1 = vrot.slane %v4691_v46, 4 }
 0x3f6   : > { %v1959_v3 = vrot.slane %v1865_v57, 4  ;;  %v1958_v52 = vsel %vm239_vm0, %v1957_v12, %v1865_v57 }
 0x3f7   : > { %v1964_v22 = vperm.slane %v1958_v52, %v3951_v11 }
 0x3f8   : > { %v1960_v24 = vsel %vm239_vm0, %v1929_v50, %v1959_v3 }
 0x3f9   : > { %v1968_v37 = vperm.slane %v1960_v24, %v3951_v11  ;;  %v1969_v4 = vrot.slane %v1964_v22, 4 }
 0x3fb   : > { %v1930_v8 = vpop.trf.xlu0  ;;  %v1981_v32 = vrot.slane %v1968_v37, 4 }
 0x3fc   : > { %v4696_v14 = vpop.trf.xlu2  ;;  %v2013_v23 = vrot.slane %v1930_v8, 4 }
 0x3fd   : > { %v1866_v39 = vpop.trf.xlu1  ;;  %v2059_v24 = vrot.slane %v4696_v14, 4 }
 0x3fe   : > { %v2015_v36 = vrot.slane %v1866_v39, 4  ;;  %v2014_v9 = vsel %vm239_vm0, %v2013_v23, %v1866_v39 }
 0x3ff   : > { %v2020_v34 = vperm.slane %v2014_v9, %v3951_v11 }
 0x400   : > { %v2016_v21 = vsel %vm239_vm0, %v1930_v8, %v2015_v36 }
 0x401   : > { %v2024_v45 = vperm.slane %v2016_v21, %v3951_v11  ;;  %v2025_v7 = vrot.slane %v2020_v34, 4 }
 0x403   : > { %v1931_v38 = vpop.trf.xlu0  ;;  %v2037_v10 = vrot.slane %v2024_v45, 4 }
 0x404   : > { %v4709_v19 = vpop.trf.xlu2  ;;  %v2069_v15 = vrot.slane %v1931_v38, 4 }
 0x405   : > { %v1867_v0 = vpop.trf.xlu1 }
 0x406   : > { %v2071_v63 = vrot.slane %v1867_v0, 4  ;;  %v2070_v48 = vsel %vm239_vm0, %v2069_v15, %v1867_v0 }
 0x407   : > { %v4737_v43 = vperm.slane %v2070_v48, %v3951_v11 }
 0x408   : > { %v2072_v56 = vsel %vm239_vm0, %v1931_v38, %v2071_v63 }
 0x409   : > { %v2080_v50 = vperm.slane %v2072_v56, %v3951_v11 }
 0x40b   : > { %v1932_v30 = vpop.trf.xlu0 }
 0x40c   : > { %v1897_v27 = vpop.trf.xlu2 }
 0x40d   : > { %v1945_v51 = vrot.slane %v1897_v27, 4  ;;  %v1948_v26 = vsel %vm239_vm0, %v1897_v27, %v1947_v41  ;;  %v1868_v35 = vpop.trf.xlu1  ;;  %v2125_v41 = vrot.slane %v1932_v30, 4 }
 0x40e   : > { %v1956_v6 = vperm.slane %v1948_v26, %v3951_v11  ;;  %v2127_v54 = vrot.slane %v1868_v35, 4  ;;  %v2093_v26 = vrot.slane %v2080_v50, 4 }
 0x40f   : > { %v1946_v47 = vsel %vm239_vm0, %v1945_v51, %v1833_v58  ;;  %v2126_v63 = vsel %vm239_vm0, %v2125_v41, %v1868_v35 }
 0x410   : > { %v1952_v53 = vperm.slane %v1946_v47, %v3951_v11  ;;  %v1982_v31 = vsel %vm239_vm0, %v1981_v32, %v1956_v6  ;;  %v1983_v20 = vrot.slane %v1956_v6, 4  ;;  %v2128_v21 = vsel %vm239_vm0, %v1932_v30, %v2127_v54 }
 0x411   : > { %v1988_v49 = vperm.slane %v1982_v31, %v3965_v18 }
 0x412   : > { %v1970_v55 = vsel %vm239_vm0, %v1969_v4, %v1952_v53  ;;  %v1971_v61 = vrot.slane %v1952_v53, 4  ;;  %v1984_v33 = vsel %vm239_vm0, %v1968_v37, %v1983_v20  ;;  %v2081_v37 = vrot.slane %v4737_v43, 4 }
 0x413   : > { %v1976_v59 = vperm.slane %v1970_v55, %v3965_v18  ;;  %v1992_v60 = vperm.slane %v1984_v33, %v3965_v18  ;;  %v1997_v62 = vrot.slane %v1988_v49, 4  ;;  %2209 = vst [vmem:[#allocation1 + $0x20] ss:$2 sm:$0xff] %v1988_v49  ;;  %v2136_v49 = vperm.slane %v2128_v21, %v3951_v11 }
 0x414   : > { %v1972_v2 = vsel %vm239_vm0, %v1964_v22, %v1971_v61  ;;  %v1898_v16 = vpop.trf.xlu2 }
 0x415   : > { %v1980_v13 = vperm.slane %v1972_v2, %v3965_v18  ;;  %v1993_v25 = vrot.slane %v1976_v59, 4  ;;  %v1998_v28 = vsel %vm239_vm0, 0.0, %v1997_v62  ;;  %v1999_v29 = vrot.slane %v1992_v60, 4  ;;  %2201 = vst [vmem:[#allocation1] ss:$2 sm:$0xff] %v1976_v59 }
 0x416   : > { %2211 = vst [vmem:[#allocation1 + $0x21] ss:$2 sm:$0xff] %v1998_v28  ;;  %v2001_v42 = vrot.slane %v1898_v16, 4  ;;  %v2004_v40 = vsel %vm239_vm0, %v1898_v16, %v2003_v1  ;;  %v2115_v16 = vrot.slane %v4709_v19, 4 }
 0x417   : > { %v1994_v44 = vsel %vm239_vm0, 0.0, %v1993_v25  ;;  %v1995_v5 = vrot.slane %v1980_v13, 4  ;;  %2205 = vst [vmem:[#allocation1 + $0x10] ss:$2 sm:$0xff] %v1980_v13  ;;  %v2012_v17 = vperm.slane %v2004_v40, %v3951_v11  ;;  %v2000_v58 = vsel %vm239_vm0, 0.0, %v1999_v29 }
 0x418   : > { %2203 = vst [vmem:[#allocation1 + $0x1] ss:$2 sm:$0xff] %v1994_v44  ;;  %v2002_v57 = vsel %vm239_vm0, %v2001_v42, %v4691_v46  ;;  %v2149_v42 = vrot.slane %v2136_v49, 4 }
 0x419   : > { %v1996_v3 = vsel %vm239_vm0, 0.0, %v1995_v5  ;;  %2213 = vst [vmem:[#allocation1 + $0x30] ss:$2 sm:$0xff] %v1992_v60  ;;  %v2008_v39 = vperm.slane %v2002_v57, %v3951_v11  ;;  %v2038_v8 = vsel %vm239_vm0, %v2037_v10, %v2012_v17  ;;  %v2039_v12 = vrot.slane %v2012_v17, 4 }
 0x41a   : > { %2207 = vst [vmem:[#allocation1 + $0x11] ss:$2 sm:$0xff] %v1996_v3  ;;  %v2044_v52 = vperm.slane %v2038_v8, %v3965_v18  ;;  %v2132_v10 = vperm.slane %v2126_v63, %v3951_v11 }
 0x41b   : > { %2215 = vst [vmem:[#allocation1 + $0x31] ss:$2 sm:$0xff] %v2000_v58  ;;  %v2026_v46 = vsel %vm239_vm0, %v2025_v7, %v2008_v39  ;;  %v2027_v36 = vrot.slane %v2008_v39, 4  ;;  %v2040_v22 = vsel %vm239_vm0, %v2024_v45, %v2039_v12 }
 0x41c   : > { %v2032_v23 = vperm.slane %v2026_v46, %v3965_v18  ;;  %v2048_v0 = vperm.slane %v2040_v22, %v3965_v18  ;;  %v2053_v32 = vrot.slane %v2044_v52, 4  ;;  %v1899_v27 = vpop.trf.xlu2 }
 0x41d   : > { %v4756_v38 = vld.sshfl [vmem:[#allocation1 + $0x20] sm:$0xff pattern:$0x75316420]  ;;  %v2028_v51 = vsel %vm239_vm0, %v2020_v34, %v2027_v36  ;;  %v2057_v4 = vrot.slane %v1899_v27, 4  ;;  %v2060_v6 = vsel %vm239_vm0, %v1899_v27, %v2059_v24 }
 0x41e   : > { %v2036_v47 = vperm.slane %v2028_v51, %v3965_v18  ;;  %v2049_v9 = vrot.slane %v2032_v23, 4  ;;  %v2054_v45 = vsel %vm239_vm0, 0.0, %v2053_v32  ;;  %v2055_v15 = vrot.slane %v2048_v0, 4  ;;  %2224 = vst [vmem:[#allocation1 + $0x20] ss:$2 sm:$0xff] %v2044_v52 }
 0x41f   : > { %2225 = vst [vmem:[#allocation1 + $0x21] ss:$2 sm:$0xff] %v2054_v45  ;;  %v2058_v53 = vsel %vm239_vm0, %v2057_v4, %v4696_v14  ;;  %v2068_v31 = vperm.slane %v2060_v6, %v3951_v11  ;;  %v2216_v20 = vld.sshfl [vmem:[#allocation1] sm:$0xff pattern:$0x75316420] }
 0x420   : > { %v2050_v55 = vsel %vm239_vm0, 0.0, %v2049_v9  ;;  %v2051_v61 = vrot.slane %v2036_v47, 4  ;;  %v2056_v33 = vsel %vm239_vm0, 0.0, %v2055_v15  ;;  %v2064_v34 = vperm.slane %v2058_v53, %v3951_v11  ;;  %3665 = vmatmul.msk.f32.vlgmr.msrb.gmra.mxu0 %vm816_vm4, %v2216_v20  ;;  %2220 = vst [vmem:[#allocation1] ss:$2 sm:$0xff] %v2032_v23 }
 0x421   : > { %v2094_v59 = vsel %vm239_vm0, %v2093_v26, %v2068_v31  ;;  %v2095_v14 = vrot.slane %v2068_v31, 4  ;;  %2221 = vst [vmem:[#allocation1 + $0x1] ss:$2 sm:$0xff] %v2050_v55  ;;  %v2217_v60 = vld.sshfl [vmem:[#allocation1 + $0x10] sm:$0xff pattern:$0x75316420] }
 0x422   : > { %v4772_v62 = vld.sshfl [vmem:[#allocation1 + $0x30] sm:$0xff pattern:$0x75316420]  ;;  %v2082_v48 = vsel %vm239_vm0, %v2081_v37, %v2064_v34  ;;  %v2083_v1 = vrot.slane %v2064_v34, 4  ;;  %v2100_v2 = vperm.slane %v2094_v59, %v3965_v18  ;;  %3666 = vmatmul.msk.f32.vlgmr.msra.gmra.mxu1 %vm816_vm4, %v2217_v60  ;;  %v2052_v56 = vsel %vm239_vm0, 0.0, %v2051_v61 }
 0x423   : > { %2226 = vst [vmem:[#allocation1 + $0x30] ss:$2 sm:$0xff] %v2048_v0  ;;  %v2088_v13 = vperm.slane %v2082_v48, %v3965_v18  ;;  %v2096_v25 = vsel %vm239_vm0, %v2080_v50, %v2095_v14  ;;  %v2137_v50 = vrot.slane %v2132_v10, 4 }
 0x424   : > { %2227 = vst [vmem:[#allocation1 + $0x31] ss:$2 sm:$0xff] %v2056_v33  ;;  %v2084_v28 = vsel %vm239_vm0, %v4737_v43, %v2083_v1  ;;  %v2104_v29 = vperm.slane %v2096_v25, %v3965_v18  ;;  %v2109_v35 = vrot.slane %v2100_v2, 4  ;;  %v1900_v40 = vpop.trf.xlu2 }
 0x425   : > { %v2092_v44 = vperm.slane %v2084_v28, %v3965_v18  ;;  %v2105_v5 = vrot.slane %v2088_v13, 4  ;;  %2222 = vst [vmem:[#allocation1 + $0x10] ss:$2 sm:$0xff] %v2036_v47  ;;  %v2113_v7 = vrot.slane %v1900_v40, 4  ;;  %v2116_v17 = vsel %vm239_vm0, %v1900_v40, %v2115_v16 }
 0x426   : > { %v2110_v58 = vsel %vm239_vm0, 0.0, %v2109_v35  ;;  %v2111_v57 = vrot.slane %v2104_v29, 4  ;;  %2223 = vst [vmem:[#allocation1 + $0x11] ss:$2 sm:$0xff] %v2052_v56  ;;  %v2124_v54 = vperm.slane %v2116_v17, %v3951_v11 }
 0x427   : > { %v2114_v43 = vsel %vm239_vm0, %v2113_v7, %v4709_v19  ;;  %v2230_v30 = vld.sshfl [vmem:[#allocation1 + $0x20] sm:$0xff pattern:$0x75316420]  ;;  %v2106_v3 = vsel %vm239_vm0, 0.0, %v2105_v5  ;;  %v2107_v24 = vrot.slane %v2092_v44, 4 }
 0x428   : > { %v2120_v39 = vperm.slane %v2114_v43, %v3951_v11  ;;  %v2150_v8 = vsel %vm239_vm0, %v2149_v42, %v2124_v54  ;;  %v2151_v12 = vrot.slane %v2124_v54, 4  ;;  %2236 = vst [vmem:[#allocation1 + $0x20] ss:$2 sm:$0xff] %v2100_v2  ;;  %3671 = vmatmul.msk.f32.vlgmr.msra.gmra.mxu2 %vm816_vm4, %v2230_v30  ;;  %v2228_v37 = vld.sshfl [vmem:[#allocation1] sm:$0xff pattern:$0x75316420] }
 0x429   : > { %v2156_v52 = vperm.slane %v2150_v8, %v3965_v18  ;;  %2237 = vst [vmem:[#allocation1 + $0x21] ss:$2 sm:$0xff] %v2110_v58  ;;  %v2112_v46 = vsel %vm239_vm0, 0.0, %v2111_v57  ;;  %v2108_v21 = vsel %vm239_vm0, 0.0, %v2107_v24 }
 0x42a   : > { %v2138_v19 = vsel %vm239_vm0, %v2137_v50, %v2120_v39  ;;  %v2139_v36 = vrot.slane %v2120_v39, 4  ;;  %v2152_v22 = vsel %vm239_vm0, %v2136_v49, %v2151_v12  ;;  %3667 = vmatmul.msk.f32.gmra.mxu1 %vm816_vm4, %v4756_v38  ;;  %2232 = vst [vmem:[#allocation1] ss:$2 sm:$0xff] %v2088_v13 }
 0x42b   : > { %v2144_v11 = vperm.slane %v2138_v19, %v3965_v18  ;;  %v2160_v41 = vperm.slane %v2152_v22, %v3965_v18  ;;  %v2165_v23 = vrot.slane %v2156_v52, 4  ;;  %v2231_v0 = vld.sshfl [vmem:[#allocation1 + $0x30] sm:$0xff pattern:$0x75316420]  ;;  %2233 = vst [vmem:[#allocation1 + $0x1] ss:$2 sm:$0xff] %v2106_v3 }
 0x42c   : > { %v2140_v32 = vsel %vm239_vm0, %v2132_v10, %v2139_v36  ;;  %2238 = vst [vmem:[#allocation1 + $0x30] ss:$2 sm:$0xff] %v2104_v29 }
 0x42d   : > { %v2161_v27 = vrot.slane %v2144_v11, 4  ;;  %2239 = vst [vmem:[#allocation1 + $0x31] ss:$2 sm:$0xff] %v2112_v46  ;;  %v2148_v51 = vperm.slane %v2140_v32, %v3965_v18  ;;  %v2229_v26 = vld.sshfl [vmem:[#allocation1 + $0x10] sm:$0xff pattern:$0x75316420] }
 0x42e   : > { %v2166_v38 = vsel %vm239_vm0, 0.0, %v2165_v23  ;;  %v2167_v4 = vrot.slane %v2160_v41, 4  ;;  %2234 = vst [vmem:[#allocation1 + $0x10] ss:$2 sm:$0xff] %v2092_v44 }
 0x42f   : > { %2235 = vst [vmem:[#allocation1 + $0x11] ss:$2 sm:$0xff] %v2108_v21  ;;  %v2162_v47 = vsel %vm239_vm0, 0.0, %v2161_v27  ;;  %v2163_v45 = vrot.slane %v2148_v51, 4 }
 0x430   : > { %3672 = vmatmul.msk.f32.gmra.mxu2 %vm816_vm4, %v2231_v0  ;;  %v2242_v6 = vld.sshfl [vmem:[#allocation1 + $0x20] sm:$0xff pattern:$0x75316420]  ;;  %v2168_v18 = vsel %vm239_vm0, 0.0, %v2167_v4 }
 0x431   : > { %2248 = vst [vmem:[#allocation1 + $0x20] ss:$2 sm:$0xff] %v2156_v52  ;;  %v2164_v53 = vsel %vm239_vm0, 0.0, %v2163_v45 }
 0x432   : > { %3668 = vmatmul.msk.f32.gmra.mxu1 %vm816_vm4, %v4772_v62  ;;  %v2240_v9 = vld.sshfl [vmem:[#allocation1] sm:$0xff pattern:$0x75316420]  ;;  %2249 = vst [vmem:[#allocation1 + $0x21] ss:$2 sm:$0xff] %v2166_v38 }
 0x433   : > { %2244 = vst [vmem:[#allocation1] ss:$2 sm:$0xff] %v2144_v11 }
 0x434   : > { %v2243_v15 = vld.sshfl [vmem:[#allocation1 + $0x30] sm:$0xff pattern:$0x75316420]  ;;  %2245 = vst [vmem:[#allocation1 + $0x1] ss:$2 sm:$0xff] %v2162_v47 }
 0x435   : > { %2250 = vst [vmem:[#allocation1 + $0x30] ss:$2 sm:$0xff] %v2160_v41  ;;  %3676 = vmatmul.msk.f32.vlgmr.msra.gmra.mxu3 %vm816_vm4, %v2243_v15 }
 0x436   : > { %2251 = vst [vmem:[#allocation1 + $0x31] ss:$2 sm:$0xff] %v2168_v18  ;;  %v2241_v31 = vld.sshfl [vmem:[#allocation1 + $0x10] sm:$0xff pattern:$0x75316420] }
 0x437   : > { %2246 = vst [vmem:[#allocation1 + $0x10] ss:$2 sm:$0xff] %v2148_v51 }
 0x438   : > { %3673 = vmatmul.msk.f32.gmra.mxu2 %vm816_vm4, %v2240_v9  ;;  %2247 = vst [vmem:[#allocation1 + $0x11] ss:$2 sm:$0xff] %v2164_v53 }
 0x439   : > { %v2254_v49 = vld.sshfl [vmem:[#allocation1 + $0x20] sm:$0xff pattern:$0x75316420] }
 0x43a   : > { %3669 = vmatmul.msk.f32.gmra.mxu1 %vm816_vm4, %v2228_v37 }
 0x43b   : > { %v2252_v20 = vld.sshfl [vmem:[#allocation1] sm:$0xff pattern:$0x75316420] }
 0x43d   : > { %3677 = vmatmul.msk.f32.gmra.mxu3 %vm816_vm4, %v2252_v20  ;;  %v2255_v55 = vld.sshfl [vmem:[#allocation1 + $0x30] sm:$0xff pattern:$0x75316420] }
 0x43f   : > { %v2253_v63 = vld.sshfl [vmem:[#allocation1 + $0x10] sm:$0xff pattern:$0x75316420] }
 0x440   : > { %3674 = vmatmul.msk.f32.gmra.mxu2 %vm816_vm4, %v2241_v31 }
 0x442   : > { %3670 = vmatmul.msk.f32.gmra.mxu1 %vm816_vm4, %v2229_v26 }
 0x445   : > { %3678 = vmatmul.msk.f32.gmra.mxu3 %vm816_vm4, %v2253_v63 }
 0x448   : > { %3675 = vmatmul.msk.f32.gmra.mxu2 %vm816_vm4, %v2242_v6 }
 0x44d   : > { %3679 = vmatmul.msk.f32.gmra.mxu3 %vm816_vm4, %v2254_v49 }
 0x455   : > { %3680 = vmatmul.msk.f32.gmra.mxu3 %vm816_vm4, %v2255_v55 }
 0x49d   : > { %v2317_v61 = vpop.f32.mrf.mxu0 }
 0x49e   : > { %v2381_v33 = vrot.slane %v2317_v61, 4  ;;  %2413 = vxpose.xlu1.b32.start.end [1/1] (short) (narrow) %v2317_v61, 32 }
 0x49f   : > { %v2320_v34 = vpop.f32.mrf.mxu1 }
 0x4a0   : > { %2477 = vxpose.xlu2.b32.start.end [1/1] (short) (narrow) %v2320_v34, 32  ;;  %2445 = vxpose.xlu0.b32.start.end [1/1] (short) (narrow) %v2381_v33, 32  ;;  %v2382_v14 = vrot.slane %v2320_v34, 4 }
 0x4a7   : > { %v2323_v59 = vpop.f32.mrf.mxu1 }
 0x4a8   : > { %v2383_v60 = vrot.slane %v2323_v59, 4 }
 0x4ab   : > { %v2335_v62 = vpop.f32.mrf.mxu2 }
 0x4ac   : > { %v2387_v48 = vrot.slane %v2335_v62, 4 }
 0x4af   : > { %v2326_v2 = vpop.f32.mrf.mxu1 }
 0x4b0   : > { %v2384_v10 = vrot.slane %v2326_v2, 4 }
 0x4b3   : > { %v2338_v1 = vpop.f32.mrf.mxu2 }
 0x4b4   : > { %v2388_v13 = vrot.slane %v2338_v1, 4 }
 0x4b7   : > { %v2329_v16 = vpop.f32.mrf.mxu1 }
 0x4b8   : > { %v2350_v56 = vpop.f32.mrf.mxu3  ;;  %v2385_v29 = vrot.slane %v2329_v16, 4 }
 0x4b9   : > { %v2392_v25 = vrot.slane %v2350_v56, 4 }
 0x4bb   : > { %v2341_v28 = vpop.f32.mrf.mxu2 }
 0x4bc   : > { %v2389_v35 = vrot.slane %v2341_v28, 4 }
 0x4be   : > { %2509 = vxpose.xlu1.b32.start.end [1/1] (short) (narrow) %v2382_v14, 32 }
 0x4bf   : > { %v2332_v43 = vpop.f32.mrf.mxu1 }
 0x4c0   : > { %2573 = vxpose.xlu2.b32.start.end [1/1] (short) (narrow) %v2383_v60, 32  ;;  %2541 = vxpose.xlu0.b32.start.end [1/1] (short) (narrow) %v2323_v59, 32  ;;  %v2386_v8 = vrot.slane %v2332_v43, 4  ;;  %v2353_v18 = vpop.f32.mrf.mxu3 }
 0x4c1   : > { %v2393_v63 = vrot.slane %v2353_v18, 4 }
 0x4c3   : > { %v2344_v3 = vpop.f32.mrf.mxu2 }
 0x4c4   : > { %v2390_v21 = vrot.slane %v2344_v3, 4 }
 0x4c8   : > { %v2356_v49 = vpop.f32.mrf.mxu3 }
 0x4cb   : > { %v2347_v41 = vpop.f32.mrf.mxu2 }
 0x4cc   : > { %v2391_v0 = vrot.slane %v2347_v41, 4 }
 0x4de   : > { %2797 = vxpose.xlu1.b32.start.end [1/1] (short) (narrow) %v2335_v62, 32 }
 0x4e0   : > { %2829 = vxpose.xlu0.b32.start.end [1/1] (short) (narrow) %v2387_v48, 32  ;;  %2861 = vxpose.xlu2.b32.start.end [1/1] (short) (narrow) %v2338_v1, 32 }
 0x4fe   : > { %2605 = vxpose.xlu1.b32.start.end [1/1] (short) (narrow) %v2326_v2, 32  ;;  %v2359_v2 = vpop.f32.mrf.mxu3 }
 0x500   : > { %2637 = vxpose.xlu0.b32.start.end [1/1] (short) (narrow) %v2384_v10, 32  ;;  %2669 = vxpose.xlu2.b32.start.end [1/1] (short) (narrow) %v2329_v16, 32  ;;  %v2394_v10 = vrot.slane %v2356_v49, 4 }
 0x51e   : > { %2893 = vxpose.xlu1.b32.start.end [1/1] (short) (narrow) %v2388_v13, 32  ;;  %v2395_v13 = vrot.slane %v2359_v2, 4 }
 0x520   : > { %3117 = vxpose.xlu0.b32.start.end [1/1] (short) (narrow) %v2350_v56, 32  ;;  %3149 = vxpose.xlu2.b32.start.end [1/1] (short) (narrow) %v2392_v25, 32 }
 0x539   : > { %v2493_v44 = vpop.trf.xlu2 }
 0x53a   : > { %3445 = vst.msk [vmem:[%s4827_s23 + $0x40] sm:$0xff] %vm807_vm1, %v2493_v44 }
 0x53e   : > { %2701 = vxpose.xlu1.b32.start.end [1/1] (short) (narrow) %v2385_v29, 32 }
 0x540   : > { %2925 = vxpose.xlu0.b32.start.end [1/1] (short) (narrow) %v2341_v28, 32  ;;  %2957 = vxpose.xlu2.b32.start.end [1/1] (short) (narrow) %v2389_v35, 32 }
 0x541   : > { %v2494_v17 = vpop.trf.xlu2 }
 0x542   : > { %v2429_v42 = vpop.trf.xlu1  ;;  %3446 = vst.msk [vmem:[%s4827_s23 + $0x48] sm:$0xff] %vm807_vm1, %v2494_v17 }
 0x543   : > { %3437 = vst.msk [vmem:[%s4827_s23] sm:$0xff] %vm807_vm1, %v2429_v42 }
 0x544   : > { %v2461_v40 = vpop.trf.xlu0 }
 0x545   : > { %3441 = vst.msk [vmem:[%s4827_s23 + $0x20] sm:$0xff] %vm807_vm1, %v2461_v40 }
 0x549   : > { %v2495_v50 = vpop.trf.xlu2 }
 0x54a   : > { %v2430_v5 = vpop.trf.xlu1  ;;  %3447 = vst.msk [vmem:[%s4827_s23 + $0x50] sm:$0xff] %vm807_vm1, %v2495_v50 }
 0x54b   : > { %3438 = vst.msk [vmem:[%s4827_s23 + $0x8] sm:$0xff] %vm807_vm1, %v2430_v5 }
 0x54c   : > { %v2462_v7 = vpop.trf.xlu0 }
 0x54d   : > { %3442 = vst.msk [vmem:[%s4827_s23 + $0x28] sm:$0xff] %vm807_vm1, %v2462_v7 }
 0x551   : > { %v2496_v39 = vpop.trf.xlu2 }
 0x552   : > { %v2431_v58 = vpop.trf.xlu1  ;;  %3448 = vst.msk [vmem:[%s4827_s23 + $0x58] sm:$0xff] %vm807_vm1, %v2496_v39 }
 0x553   : > { %3439 = vst.msk [vmem:[%s4827_s23 + $0x10] sm:$0xff] %vm807_vm1, %v2431_v58  ;;  %v2362_v58 = vpop.f32.mrf.mxu3 }
 0x554   : > { %v2463_v57 = vpop.trf.xlu0 }
 0x555   : > { %3443 = vst.msk [vmem:[%s4827_s23 + $0x30] sm:$0xff] %vm807_vm1, %v2463_v57 }
 0x559   : > { %v2589_v52 = vpop.trf.xlu2 }
 0x55a   : > { %v2432_v54 = vpop.trf.xlu1  ;;  %3457 = vst.msk [vmem:[%s4827_s23 + $0xa0] sm:$0xff] %vm807_vm1, %v2589_v52 }
 0x55b   : > { %3440 = vst.msk [vmem:[%s4827_s23 + $0x18] sm:$0xff] %vm807_vm1, %v2432_v54  ;;  %v2396_v54 = vrot.slane %v2362_v58, 4 }
 0x55c   : > { %v2464_v30 = vpop.trf.xlu0 }
 0x55d   : > { %3444 = vst.msk [vmem:[%s4827_s23 + $0x38] sm:$0xff] %vm807_vm1, %v2464_v30 }
 0x55e   : > { %2989 = vxpose.xlu1.b32.start.end [1/1] (short) (narrow) %v2344_v3, 32 }
 0x560   : > { %2733 = vxpose.xlu0.b32.start.end [1/1] (short) (narrow) %v2332_v43, 32  ;;  %2765 = vxpose.xlu2.b32.start.end [1/1] (short) (narrow) %v2386_v8, 32 }
 0x561   : > { %v2590_v19 = vpop.trf.xlu2 }
 0x562   : > { %v2525_v12 = vpop.trf.xlu1  ;;  %3458 = vst.msk [vmem:[%s4827_s23 + $0xa8] sm:$0xff] %vm807_vm1, %v2590_v19 }
 0x563   : > { %3449 = vst.msk [vmem:[%s4827_s23 + $0x60] sm:$0xff] %vm807_vm1, %v2525_v12 }
 0x564   : > { %v2557_v24 = vpop.trf.xlu0 }
 0x565   : > { %3453 = vst.msk [vmem:[%s4827_s23 + $0x80] sm:$0xff] %vm807_vm1, %v2557_v24 }
 0x569   : > { %v2591_v11 = vpop.trf.xlu2 }
 0x56a   : > { %v2526_v37 = vpop.trf.xlu1  ;;  %3459 = vst.msk [vmem:[%s4827_s23 + $0xb0] sm:$0xff] %vm807_vm1, %v2591_v11 }
 0x56b   : > { %3450 = vst.msk [vmem:[%s4827_s23 + $0x68] sm:$0xff] %vm807_vm1, %v2526_v37 }
 0x56c   : > { %v2558_v46 = vpop.trf.xlu0 }
 0x56d   : > { %3454 = vst.msk [vmem:[%s4827_s23 + $0x88] sm:$0xff] %vm807_vm1, %v2558_v46 }
 0x571   : > { %v2592_v27 = vpop.trf.xlu2 }
 0x572   : > { %v2527_v36 = vpop.trf.xlu1  ;;  %3460 = vst.msk [vmem:[%s4827_s23 + $0xb8] sm:$0xff] %vm807_vm1, %v2592_v27 }
 0x573   : > { %3451 = vst.msk [vmem:[%s4827_s23 + $0x70] sm:$0xff] %vm807_vm1, %v2527_v36 }
 0x574   : > { %v2559_v22 = vpop.trf.xlu0 }
 0x575   : > { %3455 = vst.msk [vmem:[%s4827_s23 + $0x90] sm:$0xff] %vm807_vm1, %v2559_v22 }
 0x579   : > { %v2877_v38 = vpop.trf.xlu2 }
 0x57a   : > { %v2528_v23 = vpop.trf.xlu1  ;;  %3493 = vst.msk [vmem:[%s4827_s23 + $0x1c0] sm:$0xff] %vm807_vm1, %v2877_v38 }
 0x57b   : > { %3452 = vst.msk [vmem:[%s4827_s23 + $0x78] sm:$0xff] %vm807_vm1, %v2528_v23 }
 0x57c   : > { %v2560_v32 = vpop.trf.xlu0 }
 0x57d   : > { %3456 = vst.msk [vmem:[%s4827_s23 + $0x98] sm:$0xff] %vm807_vm1, %v2560_v32 }
 0x57e   : > { %3085 = vxpose.xlu1.b32.start.end [1/1] (short) (narrow) %v2391_v0, 32 }
 0x580   : > { %3021 = vxpose.xlu0.b32.start.end [1/1] (short) (narrow) %v2390_v21, 32  ;;  %3053 = vxpose.xlu2.b32.start.end [1/1] (short) (narrow) %v2347_v41, 32 }
 0x581   : > { %v2878_v47 = vpop.trf.xlu2 }
 0x582   : > { %v2813_v51 = vpop.trf.xlu1  ;;  %3494 = vst.msk [vmem:[%s4827_s23 + $0x1c8] sm:$0xff] %vm807_vm1, %v2878_v47 }
 0x583   : > { %3485 = vst.msk [vmem:[%s4827_s23 + $0x180] sm:$0xff] %vm807_vm1, %v2813_v51 }
 0x584   : > { %v2845_v26 = vpop.trf.xlu0 }
 0x585   : > { %3489 = vst.msk [vmem:[%s4827_s23 + $0x1a0] sm:$0xff] %vm807_vm1, %v2845_v26 }
 0x589   : > { %v2879_v15 = vpop.trf.xlu2 }
 0x58a   : > { %v2814_v4 = vpop.trf.xlu1  ;;  %3495 = vst.msk [vmem:[%s4827_s23 + $0x1d0] sm:$0xff] %vm807_vm1, %v2879_v15 }
 0x58b   : > { %3486 = vst.msk [vmem:[%s4827_s23 + $0x188] sm:$0xff] %vm807_vm1, %v2814_v4 }
 0x58c   : > { %v2846_v6 = vpop.trf.xlu0 }
 0x58d   : > { %3490 = vst.msk [vmem:[%s4827_s23 + $0x1a8] sm:$0xff] %vm807_vm1, %v2846_v6 }
 0x591   : > { %v2880_v20 = vpop.trf.xlu2 }
 0x592   : > { %v2815_v9 = vpop.trf.xlu1  ;;  %3496 = vst.msk [vmem:[%s4827_s23 + $0x1d8] sm:$0xff] %vm807_vm1, %v2880_v20 }
 0x593   : > { %3487 = vst.msk [vmem:[%s4827_s23 + $0x190] sm:$0xff] %vm807_vm1, %v2815_v9 }
 0x594   : > { %v2847_v45 = vpop.trf.xlu0 }
 0x595   : > { %3491 = vst.msk [vmem:[%s4827_s23 + $0x1b0] sm:$0xff] %vm807_vm1, %v2847_v45 }
 0x599   : > { %v2685_v33 = vpop.trf.xlu2 }
 0x59a   : > { %v2816_v53 = vpop.trf.xlu1  ;;  %3469 = vst.msk [vmem:[%s4827_s23 + $0x100] sm:$0xff] %vm807_vm1, %v2685_v33 }
 0x59b   : > { %3488 = vst.msk [vmem:[%s4827_s23 + $0x198] sm:$0xff] %vm807_vm1, %v2816_v53 }
 0x59c   : > { %v2848_v31 = vpop.trf.xlu0 }
 0x59d   : > { %3492 = vst.msk [vmem:[%s4827_s23 + $0x1b8] sm:$0xff] %vm807_vm1, %v2848_v31 }
 0x59e   : > { %3181 = vxpose.xlu1.b32.start.end [1/1] (short) (narrow) %v2353_v18, 32 }
 0x5a0   : > { %3213 = vxpose.xlu0.b32.start.end [1/1] (short) (narrow) %v2393_v63, 32  ;;  %3245 = vxpose.xlu2.b32.start.end [1/1] (short) (narrow) %v2356_v49, 32 }
 0x5a1   : > { %v2686_v14 = vpop.trf.xlu2 }
 0x5a2   : > { %v2621_v55 = vpop.trf.xlu1  ;;  %3470 = vst.msk [vmem:[%s4827_s23 + $0x108] sm:$0xff] %vm807_vm1, %v2686_v14 }
 0x5a3   : > { %3461 = vst.msk [vmem:[%s4827_s23 + $0xc0] sm:$0xff] %vm807_vm1, %v2621_v55 }
 0x5a4   : > { %v2653_v61 = vpop.trf.xlu0 }
 0x5a5   : > { %3465 = vst.msk [vmem:[%s4827_s23 + $0xe0] sm:$0xff] %vm807_vm1, %v2653_v61 }
 0x5a9   : > { %v2687_v48 = vpop.trf.xlu2 }
 0x5aa   : > { %v2622_v34 = vpop.trf.xlu1  ;;  %3471 = vst.msk [vmem:[%s4827_s23 + $0x110] sm:$0xff] %vm807_vm1, %v2687_v48 }
 0x5ab   : > { %3462 = vst.msk [vmem:[%s4827_s23 + $0xc8] sm:$0xff] %vm807_vm1, %v2622_v34 }
 0x5ac   : > { %v2654_v59 = vpop.trf.xlu0 }
 0x5ad   : > { %3466 = vst.msk [vmem:[%s4827_s23 + $0xe8] sm:$0xff] %vm807_vm1, %v2654_v59 }
 0x5b1   : > { %v2688_v56 = vpop.trf.xlu2 }
 0x5b2   : > { %v2623_v60 = vpop.trf.xlu1  ;;  %3472 = vst.msk [vmem:[%s4827_s23 + $0x118] sm:$0xff] %vm807_vm1, %v2688_v56 }
 0x5b3   : > { %3463 = vst.msk [vmem:[%s4827_s23 + $0xd0] sm:$0xff] %vm807_vm1, %v2623_v60 }
 0x5b4   : > { %v2655_v62 = vpop.trf.xlu0 }
 0x5b5   : > { %3467 = vst.msk [vmem:[%s4827_s23 + $0xf0] sm:$0xff] %vm807_vm1, %v2655_v62 }
 0x5b9   : > { %v3165_v29 = vpop.trf.xlu2 }
 0x5ba   : > { %v2624_v1 = vpop.trf.xlu1  ;;  %3529 = vst.msk [vmem:[%s4827_s23 + $0x2e0] sm:$0xff] %vm807_vm1, %v3165_v29 }
 0x5bb   : > { %3464 = vst.msk [vmem:[%s4827_s23 + $0xd8] sm:$0xff] %vm807_vm1, %v2624_v1 }
 0x5bc   : > { %v2656_v16 = vpop.trf.xlu0 }
 0x5bd   : > { %3468 = vst.msk [vmem:[%s4827_s23 + $0xf8] sm:$0xff] %vm807_vm1, %v2656_v16 }
 0x5be   : > { %3277 = vxpose.xlu1.b32.start.end [1/1] (short) (narrow) %v2394_v10, 32 }
 0x5c0   : > { %3309 = vxpose.xlu0.b32.start.end [1/1] (short) (narrow) %v2359_v2, 32  ;;  %3341 = vxpose.xlu2.b32.start.end [1/1] (short) (narrow) %v2395_v13, 32 }
 0x5c1   : > { %v3166_v40 = vpop.trf.xlu2 }
 0x5c2   : > { %v2909_v25 = vpop.trf.xlu1  ;;  %3530 = vst.msk [vmem:[%s4827_s23 + $0x2e8] sm:$0xff] %vm807_vm1, %v3166_v40 }
 0x5c3   : > { %3497 = vst.msk [vmem:[%s4827_s23 + $0x1e0] sm:$0xff] %vm807_vm1, %v2909_v25 }
 0x5c4   : > { %v3133_v28 = vpop.trf.xlu0 }
 0x5c5   : > { %3525 = vst.msk [vmem:[%s4827_s23 + $0x2c0] sm:$0xff] %vm807_vm1, %v3133_v28 }
 0x5c9   : > { %v3167_v7 = vpop.trf.xlu2 }
 0x5ca   : > { %v2910_v35 = vpop.trf.xlu1  ;;  %3531 = vst.msk [vmem:[%s4827_s23 + $0x2f0] sm:$0xff] %vm807_vm1, %v3167_v7 }
 0x5cb   : > { %3498 = vst.msk [vmem:[%s4827_s23 + $0x1e8] sm:$0xff] %vm807_vm1, %v2910_v35 }
 0x5cc   : > { %v3134_v42 = vpop.trf.xlu0 }
 0x5cd   : > { %3526 = vst.msk [vmem:[%s4827_s23 + $0x2c8] sm:$0xff] %vm807_vm1, %v3134_v42 }
 0x5d1   : > { %v3168_v50 = vpop.trf.xlu2 }
 0x5d2   : > { %v2911_v44 = vpop.trf.xlu1  ;;  %3532 = vst.msk [vmem:[%s4827_s23 + $0x2f8] sm:$0xff] %vm807_vm1, %v3168_v50 }
 0x5d3   : > { %3499 = vst.msk [vmem:[%s4827_s23 + $0x1f0] sm:$0xff] %vm807_vm1, %v2911_v44 }
 0x5d4   : > { %v3135_v5 = vpop.trf.xlu0 }
 0x5d5   : > { %3527 = vst.msk [vmem:[%s4827_s23 + $0x2d0] sm:$0xff] %vm807_vm1, %v3135_v5 }
 0x5d9   : > { %v2973_v3 = vpop.trf.xlu2 }
 0x5da   : > { %v2912_v17 = vpop.trf.xlu1  ;;  %3505 = vst.msk [vmem:[%s4827_s23 + $0x220] sm:$0xff] %vm807_vm1, %v2973_v3 }
 0x5db   : > { %3500 = vst.msk [vmem:[%s4827_s23 + $0x1f8] sm:$0xff] %vm807_vm1, %v2912_v17 }
 0x5dc   : > { %v3136_v57 = vpop.trf.xlu0 }
 0x5dd   : > { %3528 = vst.msk [vmem:[%s4827_s23 + $0x2d8] sm:$0xff] %vm807_vm1, %v3136_v57 }
 0x5de   : > { %3373 = vxpose.xlu1.b32.start.end [1/1] (short) (narrow) %v2362_v58, 32 }
 0x5e0   : > { %3405 = vxpose.xlu0.b32.start.end [1/1] (short) (narrow) %v2396_v54, 32 }
 0x5e1   : > { %v2974_v12 = vpop.trf.xlu2 }
 0x5e2   : > { %v2717_v43 = vpop.trf.xlu1  ;;  %3506 = vst.msk [vmem:[%s4827_s23 + $0x228] sm:$0xff] %vm807_vm1, %v2974_v12 }
 0x5e3   : > { %3473 = vst.msk [vmem:[%s4827_s23 + $0x120] sm:$0xff] %vm807_vm1, %v2717_v43 }
 0x5e4   : > { %v2941_v30 = vpop.trf.xlu0 }
 0x5e5   : > { %3501 = vst.msk [vmem:[%s4827_s23 + $0x200] sm:$0xff] %vm807_vm1, %v2941_v30 }
 0x5e9   : > { %v2975_v37 = vpop.trf.xlu2 }
 0x5ea   : > { %v2718_v39 = vpop.trf.xlu1  ;;  %3507 = vst.msk [vmem:[%s4827_s23 + $0x230] sm:$0xff] %vm807_vm1, %v2975_v37 }
 0x5eb   : > { %3474 = vst.msk [vmem:[%s4827_s23 + $0x128] sm:$0xff] %vm807_vm1, %v2718_v39 }
 0x5ec   : > { %v2942_v8 = vpop.trf.xlu0 }
 0x5ed   : > { %3502 = vst.msk [vmem:[%s4827_s23 + $0x208] sm:$0xff] %vm807_vm1, %v2942_v8 }
 0x5f1   : > { %v2976_v36 = vpop.trf.xlu2 }
 0x5f2   : > { %v2719_v24 = vpop.trf.xlu1  ;;  %3508 = vst.msk [vmem:[%s4827_s23 + $0x238] sm:$0xff] %vm807_vm1, %v2976_v36 }
 0x5f3   : > { %3475 = vst.msk [vmem:[%s4827_s23 + $0x130] sm:$0xff] %vm807_vm1, %v2719_v24 }
 0x5f4   : > { %v2943_v52 = vpop.trf.xlu0 }
 0x5f5   : > { %3503 = vst.msk [vmem:[%s4827_s23 + $0x210] sm:$0xff] %vm807_vm1, %v2943_v52 }
 0x5f9   : > { %v2781_v41 = vpop.trf.xlu2 }
 0x5fa   : > { %v2720_v46 = vpop.trf.xlu1  ;;  %3481 = vst.msk [vmem:[%s4827_s23 + $0x160] sm:$0xff] %vm807_vm1, %v2781_v41 }
 0x5fb   : > { %3476 = vst.msk [vmem:[%s4827_s23 + $0x138] sm:$0xff] %vm807_vm1, %v2720_v46 }
 0x5fc   : > { %v2944_v19 = vpop.trf.xlu0 }
 0x5fd   : > { %3504 = vst.msk [vmem:[%s4827_s23 + $0x218] sm:$0xff] %vm807_vm1, %v2944_v19 }
 0x601   : > { %v2782_v32 = vpop.trf.xlu2 }
 0x602   : > { %v3005_v22 = vpop.trf.xlu1  ;;  %3482 = vst.msk [vmem:[%s4827_s23 + $0x168] sm:$0xff] %vm807_vm1, %v2782_v32 }
 0x603   : > { %3509 = vst.msk [vmem:[%s4827_s23 + $0x240] sm:$0xff] %vm807_vm1, %v3005_v22 }
 0x604   : > { %v2749_v11 = vpop.trf.xlu0 }
 0x605   : > { %3477 = vst.msk [vmem:[%s4827_s23 + $0x140] sm:$0xff] %vm807_vm1, %v2749_v11 }
 0x609   : > { %v2783_v51 = vpop.trf.xlu2 }
 0x60a   : > { %v3006_v23 = vpop.trf.xlu1  ;;  %3483 = vst.msk [vmem:[%s4827_s23 + $0x170] sm:$0xff] %vm807_vm1, %v2783_v51 }
 0x60b   : > { %3510 = vst.msk [vmem:[%s4827_s23 + $0x248] sm:$0xff] %vm807_vm1, %v3006_v23 }
 0x60c   : > { %v2750_v0 = vpop.trf.xlu0 }
 0x60d   : > { %3478 = vst.msk [vmem:[%s4827_s23 + $0x148] sm:$0xff] %vm807_vm1, %v2750_v0 }
 0x611   : > { %v2784_v4 = vpop.trf.xlu2 }
 0x612   : > { %v3007_v27 = vpop.trf.xlu1  ;;  %3484 = vst.msk [vmem:[%s4827_s23 + $0x178] sm:$0xff] %vm807_vm1, %v2784_v4 }
 0x613   : > { %3511 = vst.msk [vmem:[%s4827_s23 + $0x250] sm:$0xff] %vm807_vm1, %v3007_v27 }
 0x614   : > { %v2751_v21 = vpop.trf.xlu0 }
 0x615   : > { %3479 = vst.msk [vmem:[%s4827_s23 + $0x150] sm:$0xff] %vm807_vm1, %v2751_v21 }
 0x619   : > { %v3069_v9 = vpop.trf.xlu2 }
 0x61a   : > { %v3008_v26 = vpop.trf.xlu1  ;;  %3517 = vst.msk [vmem:[%s4827_s23 + $0x280] sm:$0xff] %vm807_vm1, %v3069_v9 }
 0x61b   : > { %3512 = vst.msk [vmem:[%s4827_s23 + $0x258] sm:$0xff] %vm807_vm1, %v3008_v26 }
 0x61c   : > { %v2752_v38 = vpop.trf.xlu0 }
 0x61d   : > { %3480 = vst.msk [vmem:[%s4827_s23 + $0x158] sm:$0xff] %vm807_vm1, %v2752_v38 }
 0x621   : > { %v3070_v15 = vpop.trf.xlu2 }
 0x622   : > { %v3101_v6 = vpop.trf.xlu1  ;;  %3518 = vst.msk [vmem:[%s4827_s23 + $0x288] sm:$0xff] %vm807_vm1, %v3070_v15 }
 0x623   : > { %3521 = vst.msk [vmem:[%s4827_s23 + $0x2a0] sm:$0xff] %vm807_vm1, %v3101_v6 }
 0x624   : > { %v3037_v47 = vpop.trf.xlu0 }
 0x625   : > { %3513 = vst.msk [vmem:[%s4827_s23 + $0x260] sm:$0xff] %vm807_vm1, %v3037_v47 }
 0x629   : > { %v3071_v20 = vpop.trf.xlu2 }
 0x62a   : > { %v3102_v45 = vpop.trf.xlu1  ;;  %3519 = vst.msk [vmem:[%s4827_s23 + $0x290] sm:$0xff] %vm807_vm1, %v3071_v20 }
 0x62b   : > { %3522 = vst.msk [vmem:[%s4827_s23 + $0x2a8] sm:$0xff] %vm807_vm1, %v3102_v45 }
 0x62c   : > { %v3038_v18 = vpop.trf.xlu0 }
 0x62d   : > { %3514 = vst.msk [vmem:[%s4827_s23 + $0x268] sm:$0xff] %vm807_vm1, %v3038_v18 }
 0x631   : > { %v3072_v55 = vpop.trf.xlu2 }
 0x632   : > { %v3103_v53 = vpop.trf.xlu1  ;;  %3520 = vst.msk [vmem:[%s4827_s23 + $0x298] sm:$0xff] %vm807_vm1, %v3072_v55 }
 0x633   : > { %3523 = vst.msk [vmem:[%s4827_s23 + $0x2b0] sm:$0xff] %vm807_vm1, %v3103_v53 }
 0x634   : > { %v3039_v31 = vpop.trf.xlu0 }
 0x635   : > { %3515 = vst.msk [vmem:[%s4827_s23 + $0x270] sm:$0xff] %vm807_vm1, %v3039_v31 }
 0x639   : > { %v3261_v34 = vpop.trf.xlu2 }
 0x63a   : > { %v3104_v63 = vpop.trf.xlu1  ;;  %3541 = vst.msk [vmem:[%s4827_s23 + $0x340] sm:$0xff] %vm807_vm1, %v3261_v34 }
 0x63b   : > { %3524 = vst.msk [vmem:[%s4827_s23 + $0x2b8] sm:$0xff] %vm807_vm1, %v3104_v63 }
 0x63c   : > { %v3040_v49 = vpop.trf.xlu0 }
 0x63d   : > { %3516 = vst.msk [vmem:[%s4827_s23 + $0x278] sm:$0xff] %vm807_vm1, %v3040_v49 }
 0x641   : > { %v3262_v60 = vpop.trf.xlu2 }
 0x642   : > { %v3197_v61 = vpop.trf.xlu1  ;;  %3542 = vst.msk [vmem:[%s4827_s23 + $0x348] sm:$0xff] %vm807_vm1, %v3262_v60 }
 0x643   : > { %3533 = vst.msk [vmem:[%s4827_s23 + $0x300] sm:$0xff] %vm807_vm1, %v3197_v61 }
 0x644   : > { %v3229_v33 = vpop.trf.xlu0 }
 0x645   : > { %3537 = vst.msk [vmem:[%s4827_s23 + $0x320] sm:$0xff] %vm807_vm1, %v3229_v33 }
 0x649   : > { %v3263_v1 = vpop.trf.xlu2 }
 0x64a   : > { %v3198_v59 = vpop.trf.xlu1  ;;  %3543 = vst.msk [vmem:[%s4827_s23 + $0x350] sm:$0xff] %vm807_vm1, %v3263_v1 }
 0x64b   : > { %3534 = vst.msk [vmem:[%s4827_s23 + $0x308] sm:$0xff] %vm807_vm1, %v3198_v59 }
 0x64c   : > { %v3230_v14 = vpop.trf.xlu0 }
 0x64d   : > { %3538 = vst.msk [vmem:[%s4827_s23 + $0x328] sm:$0xff] %vm807_vm1, %v3230_v14 }
 0x651   : > { %v3264_v16 = vpop.trf.xlu2 }
 0x652   : > { %v3199_v62 = vpop.trf.xlu1  ;;  %3544 = vst.msk [vmem:[%s4827_s23 + $0x358] sm:$0xff] %vm807_vm1, %v3264_v16 }
 0x653   : > { %3535 = vst.msk [vmem:[%s4827_s23 + $0x310] sm:$0xff] %vm807_vm1, %v3199_v62 }
 0x654   : > { %v3231_v48 = vpop.trf.xlu0 }
 0x655   : > { %3539 = vst.msk [vmem:[%s4827_s23 + $0x330] sm:$0xff] %vm807_vm1, %v3231_v48 }
 0x659   : > { %v3357_v25 = vpop.trf.xlu2 }
 0x65a   : > { %v3200_v2 = vpop.trf.xlu1  ;;  %3553 = vst.msk [vmem:[%s4827_s23 + $0x3a0] sm:$0xff] %vm807_vm1, %v3357_v25 }
 0x65b   : > { %3536 = vst.msk [vmem:[%s4827_s23 + $0x318] sm:$0xff] %vm807_vm1, %v3200_v2 }
 0x65c   : > { %v3232_v10 = vpop.trf.xlu0 }
 0x65d   : > { %3540 = vst.msk [vmem:[%s4827_s23 + $0x338] sm:$0xff] %vm807_vm1, %v3232_v10 }
 0x661   : > { %v3358_v35 = vpop.trf.xlu2 }
 0x662   : > { %v3293_v56 = vpop.trf.xlu1  ;;  %3554 = vst.msk [vmem:[%s4827_s23 + $0x3a8] sm:$0xff] %vm807_vm1, %v3358_v35 }
 0x663   : > { %3545 = vst.msk [vmem:[%s4827_s23 + $0x360] sm:$0xff] %vm807_vm1, %v3293_v56 }
 0x664   : > { %v3325_v13 = vpop.trf.xlu0 }
 0x665   : > { %3549 = vst.msk [vmem:[%s4827_s23 + $0x380] sm:$0xff] %vm807_vm1, %v3325_v13 }
 0x669   : > { %v3359_v44 = vpop.trf.xlu2 }
 0x66a   : > { %v3294_v28 = vpop.trf.xlu1  ;;  %3555 = vst.msk [vmem:[%s4827_s23 + $0x3b0] sm:$0xff] %vm807_vm1, %v3359_v44 }
 0x66b   : > { %3546 = vst.msk [vmem:[%s4827_s23 + $0x368] sm:$0xff] %vm807_vm1, %v3294_v28 }
 0x66c   : > { %v3326_v29 = vpop.trf.xlu0 }
 0x66d   : > { %3550 = vst.msk [vmem:[%s4827_s23 + $0x388] sm:$0xff] %vm807_vm1, %v3326_v29 }
 0x671   : > { %v3360_v17 = vpop.trf.xlu2 }
 0x672   : > { %v3295_v42 = vpop.trf.xlu1  ;;  %3556 = vst.msk [vmem:[%s4827_s23 + $0x3b8] sm:$0xff] %vm807_vm1, %v3360_v17 }
 0x673   : > { %3547 = vst.msk [vmem:[%s4827_s23 + $0x370] sm:$0xff] %vm807_vm1, %v3295_v42 }
 0x674   : > { %v3327_v40 = vpop.trf.xlu0 }
 0x675   : > { %3551 = vst.msk [vmem:[%s4827_s23 + $0x390] sm:$0xff] %vm807_vm1, %v3327_v40 }
 0x67a   : > { %v3296_v5 = vpop.trf.xlu1 }
 0x67b   : > { %3548 = vst.msk [vmem:[%s4827_s23 + $0x378] sm:$0xff] %vm807_vm1, %v3296_v5 }
 0x67c   : > { %v3328_v7 = vpop.trf.xlu0 }
 0x67d   : > { %3552 = vst.msk [vmem:[%s4827_s23 + $0x398] sm:$0xff] %vm807_vm1, %v3328_v7 }
 0x682   : > { %v3389_v58 = vpop.trf.xlu1 }
 0x683   : > { %3557 = vst.msk [vmem:[%s4827_s23 + $0x3c0] sm:$0xff] %vm807_vm1, %v3389_v58 }
 0x684   : > { %v3421_v57 = vpop.trf.xlu0 }
 0x685   : > { %3561 = vst.msk [vmem:[%s4827_s23 + $0x3e0] sm:$0xff] %vm807_vm1, %v3421_v57 }
 0x68a   : > { %v3390_v50 = vpop.trf.xlu1 }
 0x68b   : > { %3558 = vst.msk [vmem:[%s4827_s23 + $0x3c8] sm:$0xff] %vm807_vm1, %v3390_v50 }
 0x68c   : > { %v3422_v54 = vpop.trf.xlu0 }
 0x68d   : > { %3562 = vst.msk [vmem:[%s4827_s23 + $0x3e8] sm:$0xff] %vm807_vm1, %v3422_v54 }
 0x692   : > { %v3391_v43 = vpop.trf.xlu1 }
 0x693   : > { %3559 = vst.msk [vmem:[%s4827_s23 + $0x3d0] sm:$0xff] %vm807_vm1, %v3391_v43 }
 0x694   : > { %v3423_v30 = vpop.trf.xlu0 }
 0x695   : > { %3563 = vst.msk [vmem:[%s4827_s23 + $0x3f0] sm:$0xff] %vm807_vm1, %v3423_v30 }
 0x69a   : > { %v3392_v3 = vpop.trf.xlu1 }
 0x69b   : > { %3560 = vst.msk [vmem:[%s4827_s23 + $0x3d8] sm:$0xff] %vm807_vm1, %v3392_v3 }
 0x69c   : > { %v3424_v39 = vpop.trf.xlu0 }
 0x69d   : > { %3564 = vst.msk [vmem:[%s4827_s23 + $0x3f8] sm:$0xff] %vm807_vm1, %v3424_v39 }
 0x69e PF: > { %s13_s14 = sadd.s32 1, %s3851_s14   ;;  %s5098_s12 = smov %s3847_s13 }
 0x69f   : > { %p10_p5 = scmp.ge.s32.totalorder %s13_s14, 4   ;;  %s5099_s13 = smov %s5101_s15 }
 0x6a1   :  { %12 = sbr.rel (!%p10_p5) target bundleno = 2 (0x2), region = 69 }

</bundles_post_ra>
